<compile_context>
chip_gen: v5e
topology: v5e:2x2
jax: 0.10.0
libtpu: 0.0.40
codegen_flags: <defaults>
</compile_context>

<pallas_src>
import math
from functools import partial

import jax
import jax.numpy as jnp
from jax import lax
from jax.experimental import pallas as pl
from jax.experimental.pallas import tpu as pltpu


_LANE = 128
_VMEM_LIMIT = 32 * 1024 * 1024  # comfortable on v5e/v6e/v7x


def _choose_tile(N, max_tile=2048):
    """Lane tile (multiple of 128); aims for >=2 grid steps and a big tile.
       Returns (tile, grid, pad)."""
    if N <= _LANE:
        tile = _LANE
    else:
        half = max(_LANE, (N // 2) // _LANE * _LANE)
        tile = min(max_tile, half)
    grid = pl.cdiv(N, tile)
    pad = grid * tile - N
    return tile, grid, pad


# ---------------------------------------------------------------------------
# Pallas kernel 1: transposed pointwise linear
#   y(Cout, tile) = W(Cout, Cin) @ x(Cin, tile) + b (+ add) (+ relu)
# ---------------------------------------------------------------------------
def _make_lin_t_kernel(has_add: bool, relu: bool):
    def compute(x, w, b, a):
        acc = jnp.dot(w, x, preferred_element_type=jnp.float32)
        acc = acc + b
        if a is not None:
            acc = acc + a
        if relu:
            acc = jnp.maximum(acc, 0.0)
        return acc

    if has_add:
        def kernel(x_ref, w_ref, b_ref, a_ref, o_ref):
            o_ref[...] = compute(x_ref[...], w_ref[...], b_ref[...],
                                 a_ref[...]).astype(o_ref.dtype)
    else:
        def kernel(x_ref, w_ref, b_ref, o_ref):
            o_ref[...] = compute(x_ref[...], w_ref[...], b_ref[...],
                                 None).astype(o_ref.dtype)
    return kernel


def pointwise_linear_t(x2, wT, b, add2=None, relu=False):
    """x2: (Cin, N), wT: (Cout, Cin), b: (Cout, 1), add2: (Cout, N) or None.
       Returns (Cout, N) float32, lane-dense along N."""
    Cin, N = x2.shape
    Cout = wT.shape[0]
    tn, grid, pad = _choose_tile(N)
    if pad:
        x2 = jnp.pad(x2, ((0, 0), (0, pad)))
        if add2 is not None:
            add2 = jnp.pad(add2, ((0, 0), (0, pad)))
    Np = N + pad

    in_specs = [
        pl.BlockSpec((Cin, tn), lambda i: (0, i)),    # activation tile
        pl.BlockSpec((Cout, Cin), lambda i: (0, 0)),  # resident weight
        pl.BlockSpec((Cout, 1), lambda i: (0, 0)),    # resident bias (lane bcast)
    ]
    args = [x2, wT, b]
    if add2 is not None:
        in_specs.append(pl.BlockSpec((Cout, tn), lambda i: (0, i)))
        args.append(add2)

    out = pl.pallas_call(
        _make_lin_t_kernel(add2 is not None, relu),
        grid=(grid,),
        in_specs=in_specs,
        out_specs=pl.BlockSpec((Cout, tn), lambda i: (0, i)),
        out_shape=jax.ShapeDtypeStruct((Cout, Np), jnp.float32),
        compiler_params=pltpu.CompilerParams(
            dimension_semantics=("parallel",),
            vmem_limit_bytes=_VMEM_LIMIT),
    )(*args)
    return out[:, :N] if pad else out


# ---------------------------------------------------------------------------
# Pallas kernel 2: fused projection head  fc2(relu(fc1(x)))
#   keeps the (128, tile) intermediate in VMEM, writes (1, N) once, lane-dense.
# ---------------------------------------------------------------------------
def _head_kernel(x_ref, w1_ref, b1_ref, w2_ref, b2_ref, o_ref):
    h = jnp.dot(w1_ref[...], x_ref[...],
                preferred_element_type=jnp.float32)            # (128, tile)
    h = jnp.maximum(h + b1_ref[...], 0.0)
    # fc2 (Cout=1): lane-broadcast multiply + sublane reduce (avoids M=1 matmul)
    y = jnp.sum(h * w2_ref[...], axis=0, keepdims=True)        # (1, tile)
    o_ref[...] = (y + b2_ref[...]).astype(o_ref.dtype)


def head_fused(x2, w1T, b1, w2c, b2):
    """x2: (width, N), w1T: (128, width), b1: (128,1), w2c: (128,1), b2: (1,1)."""
    Cin, N = x2.shape
    H1 = w1T.shape[0]
    tn, grid, pad = _choose_tile(N)
    if pad:
        x2 = jnp.pad(x2, ((0, 0), (0, pad)))
    Np = N + pad

    out = pl.pallas_call(
        _head_kernel,
        grid=(grid,),
        in_specs=[pl.BlockSpec((Cin, tn), lambda i: (0, i)),
                  pl.BlockSpec((H1, Cin), lambda i: (0, 0)),
                  pl.BlockSpec((H1, 1), lambda i: (0, 0)),
                  pl.BlockSpec((H1, 1), lambda i: (0, 0)),
                  pl.BlockSpec((1, 1), lambda i: (0, 0))],
        out_specs=pl.BlockSpec((1, tn), lambda i: (0, i)),
        out_shape=jax.ShapeDtypeStruct((1, Np), jnp.float32),
        compiler_params=pltpu.CompilerParams(
            dimension_semantics=("parallel",),
            vmem_limit_bytes=_VMEM_LIMIT),
    )(x2, w1T, b1, w2c, b2)
    return out[:, :N] if pad else out


# ---------------------------------------------------------------------------
# Pallas kernel 3: spectral channel mixing (complex-as-real batched matmul)
#   per mode m:  [yr|yi](B,2Cout) = [xr|xi](B,2Cin) @ [[wr,wi],[-wi,wr]]
#   batched over a block of modes, gridded & pipelined over all 2*m1*m2 modes.
# ---------------------------------------------------------------------------
def _spectral_kernel(x_ref, w_ref, o_ref):
    o_ref[...] = jnp.einsum("mbi,mio->mbo", x_ref[...], w_ref[...],
                            preferred_element_type=jnp.float32)


def _spectral_mode_tile(M):
    for t in (64, 48, 36, 32, 24, 18, 16, 12, 9, 8, 6, 4, 3, 2, 1):
        if t <= M and M % t == 0:
            return t
    return M


def _make_spectral_block_weight(w1, w2):
    """w1, w2: (Cin, Cout, m1, m2) complex64 ->
       (2*m1*m2, 2Cin, 2Cout) float32 block weight [[wr, wi], [-wi, wr]]."""
    def blk(w):
        Cin, Cout, m1, m2 = w.shape
        wm = jnp.transpose(w, (2, 3, 0, 1)).reshape(m1 * m2, Cin, Cout)
        wr = jnp.real(wm).astype(jnp.float32)
        wi = jnp.imag(wm).astype(jnp.float32)
        top = jnp.concatenate([wr, wi], axis=2)
        bot = jnp.concatenate([-wi, wr], axis=2)
        return jnp.concatenate([top, bot], axis=1)
    return jnp.concatenate([blk(w1), blk(w2)], axis=0)


def spectral_conv2d_cf(x, w_blk, m1, m2):
    """x: (Cin, B, H, W) f32;  w_blk: (2*m1*m2, 2Cin, 2Cout) f32.
       Returns (Cout, B, H, W) f32 — matches torch SpectralConv2d."""
    Cin, B, H, W = x.shape
    Cout = w_blk.shape[2] // 2
    M = m1 * m2
    Wf = W // 2 + 1

    # TODO(synk): rfft2/irfft2 have no Pallas equivalent; done in plain JAX.
    x_ft = jnp.fft.rfft2(x, axes=(-2, -1))            # (Cin, B, H, Wf) c64

    def pack(slc):                                    # (Cin,B,m1,m2) -> (M,B,2Cin)
        t = jnp.transpose(slc, (2, 3, 1, 0)).reshape(M, B, Cin)
        return jnp.concatenate([jnp.real(t).astype(jnp.float32),
                                jnp.imag(t).astype(jnp.float32)], axis=-1)

    x_modes = jnp.concatenate([pack(x_ft[:, :, :m1, :m2]),
                               pack(x_ft[:, :, H - m1:, :m2])], axis=0)  # (2M,B,2Cin)

    tm = _spectral_mode_tile(M)
    grid = (2 * M) // tm

    out = pl.pallas_call(
        _spectral_kernel,
        grid=(grid,),
        in_specs=[pl.BlockSpec((tm, B, 2 * Cin), lambda i: (i, 0, 0)),
                  pl.BlockSpec((tm, 2 * Cin, 2 * Cout), lambda i: (i, 0, 0))],
        out_specs=pl.BlockSpec((tm, B, 2 * Cout), lambda i: (i, 0, 0)),
        out_shape=jax.ShapeDtypeStruct((2 * M, B, 2 * Cout), jnp.float32),
        compiler_params=pltpu.CompilerParams(
            dimension_semantics=("parallel",),
            vmem_limit_bytes=_VMEM_LIMIT),
    )(x_modes, w_blk)

    yc = (out[..., :Cout] + 1j * out[..., Cout:]).astype(jnp.complex64)  # (2M,B,Cout)

    def unpack(y):                                    # (M,B,Cout) -> (Cout,B,m1,m2)
        return jnp.transpose(y.reshape(m1, m2, B, Cout), (3, 2, 0, 1))

    top = unpack(yc[:M])
    bot = unpack(yc[M:])
    pad_w = Wf - m2
    top_p = jnp.pad(top, ((0, 0), (0, 0), (0, 0), (0, pad_w)))
    bot_p = jnp.pad(bot, ((0, 0), (0, 0), (0, 0), (0, pad_w)))
    if H >= 2 * m1:
        # assemble truncated spectrum via concat (no full-size zero init + scatter)
        mid = jnp.zeros((Cout, B, H - 2 * m1, Wf), jnp.complex64)
        out_ft = jnp.concatenate([top_p, mid, bot_p], axis=2)
    else:  # overlapping bands (rare): keep torch's overwrite semantics
        out_ft = jnp.zeros((Cout, B, H, Wf), jnp.complex64)
        out_ft = out_ft.at[:, :, :m1, :].set(top_p)
        out_ft = out_ft.at[:, :, H - m1:, :].set(bot_p)

    return jnp.fft.irfft2(out_ft, s=(H, W), axes=(-2, -1)).astype(jnp.float32)


# ---------------------------------------------------------------------------
# Parameter initialisation (shape-faithful to the torch module, pre-transposed
# into the lane-dense layout; spectral block weights built once here).
# ---------------------------------------------------------------------------
def init_params(key, width, m1, m2):
    keys = jax.random.split(key, 16)
    params = {}

    def lin_t(k, cin, cout):
        k1, k2 = jax.random.split(k)
        bound = 1.0 / math.sqrt(cin)
        w = jax.random.uniform(k1, (cout, cin), jnp.float32, -bound, bound)
        b = jax.random.uniform(k2, (cout, 1), jnp.float32, -bound, bound)
        return w, b

    def spec(k, cin, cout):
        k1, k2 = jax.random.split(k)
        scale = 1.0 / (cin * cout)
        wr = scale * jax.random.uniform(k1, (cin, cout, m1, m2), jnp.float32)
        wi = scale * jax.random.uniform(k2, (cin, cout, m1, m2), jnp.float32)
        return (wr + 1j * wi).astype(jnp.complex64)

    params["fc0"] = lin_t(keys[0], 3, width)
    for i in range(4):
        w1 = spec(keys[1 + 2 * i], width, width)
        w2 = spec(keys[2 + 2 * i], width, width)
        params[f"conv{i}_wblk"] = _make_spectral_block_weight(w1, w2)
        params[f"w{i}"] = lin_t(keys[9 + i], width, width)
    params["fc1"] = lin_t(keys[13], width, 128)
    w2_, b2_ = lin_t(keys[14], 128, 1)
    params["fc2"] = (w2_.T, b2_)          # store fc2 weight as a (128, 1) column
    return params


# ---------------------------------------------------------------------------
# Full forward pass
# ---------------------------------------------------------------------------
def fno2d_forward(params, x, m1, m2):
    """x: (B, H, W, 3) float32 -> (B, H, W, 1) float32."""
    B, H, W, Cin0 = x.shape
    N = B * H * W
    width = params["fc0"][0].shape[0]

    # channels-first, lane-dense: (3, B*H*W)
    xc = jnp.transpose(x, (3, 0, 1, 2)).reshape(Cin0, N)

    # lift: fc0
    v = pointwise_linear_t(xc, *params["fc0"])                     # (width, N)

    # 4 Fourier layers: x = relu(conv_i(x) + w_i(x)); last layer has no ReLU
    for i in range(4):
        spec_out = spectral_conv2d_cf(v.reshape(width, B, H, W),
                                      params[f"conv{i}_wblk"], m1, m2)
        v = pointwise_linear_t(v, *params[f"w{i}"],
                               add2=spec_out.reshape(width, N),
                               relu=(i < 3))

    # fused projection head fc1 (+ReLU) + fc2
    y = head_fused(v, *params["fc1"], *params["fc2"])              # (1, N)
    return jnp.transpose(y.reshape(1, B, H, W), (1, 2, 3, 0))      # (B, H, W, 1)


# ---------------------------------------------------------------------------
if __name__ == "__main__":
    B, S = 2, 16
    modes1, modes2, width = 6, 6, 16

    key = jax.random.PRNGKey(0)
    kp, kx = jax.random.split(key)
    params = init_params(kp, width, modes1, modes2)
    x = jax.random.normal(kx, (B, S, S, 3), jnp.float32)

    fwd = jax.jit(partial(fno2d_forward, m1=modes1, m2=modes2))
    out = jax.block_until_ready(fwd(params, x))

    assert out.shape == (B, S, S, 1), out.shape
    assert jnp.all(jnp.isfinite(out))
    print("KERNEL_OK")
</pallas_src>

<mosaic_0001>
module attributes {stable_mosaic.version = 11 : i64} {
  func.func @kernel(%arg0: i32, %arg1: memref<3x256xf32, #tpu.memory_space<vmem>>, %arg2: memref<16x3xf32, #tpu.memory_space<vmem>>, %arg3: memref<16x1xf32, #tpu.memory_space<vmem>>, %arg4: memref<16x256xf32, #tpu.memory_space<vmem>>) attributes {dimension_semantics = [#tpu.dimension_semantics<parallel>], iteration_bounds = array<i64: 2>, scalar_prefetch = 0 : i64, scratch_operands = 0 : i64, tpu.core_type = #tpu.core_type<tc>, window_params = [{transform_indices = @transform_0, window_bounds = array<i64: 3, 256>}, {pipeline_mode = #tpu.pipeline_mode<synchronous>, transform_indices = @transform_1, window_bounds = array<i64: 16, 3>}, {pipeline_mode = #tpu.pipeline_mode<synchronous>, transform_indices = @transform_2, window_bounds = array<i64: 16, 1>}, {transform_indices = @transform_3, window_bounds = array<i64: 16, 256>}]} {
    %c0 = arith.constant 0 : index
    %c0_0 = arith.constant 0 : index
    %0 = vector.load %arg1[%c0, %c0_0] : memref<3x256xf32, #tpu.memory_space<vmem>>, vector<3x256xf32>
    %c0_1 = arith.constant 0 : index
    %c0_2 = arith.constant 0 : index
    %1 = vector.load %arg2[%c0_1, %c0_2] : memref<16x3xf32, #tpu.memory_space<vmem>>, vector<16x3xf32>
    %c0_3 = arith.constant 0 : index
    %c0_4 = arith.constant 0 : index
    %2 = vector.load %arg3[%c0_3, %c0_4] : memref<16x1xf32, #tpu.memory_space<vmem>>, vector<16x1xf32>
    %cst = arith.constant dense<0.000000e+00> : vector<16x256xf32>
    %3 = tpu.matmul %1, %0, %cst {dimension_numbers = #tpu.dot_dimension_numbers<[1], [0], [0], [1], [0, 0, 1, 1], [], []>} : vector<16x3xf32>, vector<3x256xf32>, vector<16x256xf32> -> vector<16x256xf32>
    %4 = vector.broadcast %2 : vector<16x1xf32> to vector<16x256xf32>
    %5 = arith.addf %3, %4 : vector<16x256xf32>
    %c0_5 = arith.constant 0 : index
    %c0_6 = arith.constant 0 : index
    %6 = vector.load %arg4[%c0_5, %c0_6] : memref<16x256xf32, #tpu.memory_space<vmem>>, vector<16x256xf32>
    tpu.vector_store %arg4[%c0_5, %c0_6], %5 {strides = array<i32>} : memref<16x256xf32, #tpu.memory_space<vmem>>, vector<16x256xf32>,
    return
  }
  func.func @transform_0(%arg0: i32) -> (i32, i32) {
    %c0_i32 = arith.constant 0 : i32
    %c0_i32_0 = arith.constant 0 : i32
    return %c0_i32, %arg0 : i32, i32
  }
  func.func @transform_1(%arg0: i32) -> (i32, i32) {
    %c0_i32 = arith.constant 0 : i32
    %c0_i32_0 = arith.constant 0 : i32
    %c0_i32_1 = arith.constant 0 : i32
    return %c0_i32, %c0_i32_0 : i32, i32
  }
  func.func @transform_2(%arg0: i32) -> (i32, i32) {
    %c0_i32 = arith.constant 0 : i32
    %c0_i32_0 = arith.constant 0 : i32
    %c0_i32_1 = arith.constant 0 : i32
    return %c0_i32, %c0_i32_0 : i32, i32
  }
  func.func @transform_3(%arg0: i32) -> (i32, i32) {
    %c0_i32 = arith.constant 0 : i32
    %c0_i32_0 = arith.constant 0 : i32
    return %c0_i32, %arg0 : i32, i32
  }
}

module attributes {stable_mosaic.version = 11 : i64} {
  func.func @_spectral_kernel(%arg0: i32, %arg1: memref<36x2x32xf32, #tpu.memory_space<vmem>>, %arg2: memref<36x32x32xf32, #tpu.memory_space<vmem>>, %arg3: memref<36x2x32xf32, #tpu.memory_space<vmem>>) attributes {dimension_semantics = [#tpu.dimension_semantics<parallel>], iteration_bounds = array<i64: 2>, scalar_prefetch = 0 : i64, scratch_operands = 0 : i64, tpu.core_type = #tpu.core_type<tc>, window_params = [{transform_indices = @transform_0, window_bounds = array<i64: 36, 2, 32>}, {transform_indices = @transform_1, window_bounds = array<i64: 36, 32, 32>}, {transform_indices = @transform_2, window_bounds = array<i64: 36, 2, 32>}]} {
    %c0 = arith.constant 0 : index
    %c0_0 = arith.constant 0 : index
    %c0_1 = arith.constant 0 : index
    %0 = vector.load %arg1[%c0, %c0_0, %c0_1] : memref<36x2x32xf32, #tpu.memory_space<vmem>>, vector<36x2x32xf32>
    %c0_2 = arith.constant 0 : index
    %c0_3 = arith.constant 0 : index
    %c0_4 = arith.constant 0 : index
    %1 = vector.load %arg2[%c0_2, %c0_3, %c0_4] : memref<36x32x32xf32, #tpu.memory_space<vmem>>, vector<36x32x32xf32>
    "tpu.trace_start"() <{level = 10 : i32, message = "mbi,mio->mbo"}> : () -> ()
    %cst = arith.constant dense<0.000000e+00> : vector<36x2x32xf32>
    %2 = tpu.matmul %0, %1, %cst {dimension_numbers = #tpu.dot_dimension_numbers<[2], [1], [1], [2], [0, 0, 0, 1, 1, 2], [0], [0]>} : vector<36x2x32xf32>, vector<36x32x32xf32>, vector<36x2x32xf32> -> vector<36x2x32xf32>
    "tpu.trace_stop"() : () -> ()
    %c0_5 = arith.constant 0 : index
    %c0_6 = arith.constant 0 : index
    %c0_7 = arith.constant 0 : index
    %3 = vector.load %arg3[%c0_5, %c0_6, %c0_7] : memref<36x2x32xf32, #tpu.memory_space<vmem>>, vector<36x2x32xf32>
    tpu.vector_store %arg3[%c0_5, %c0_6, %c0_7], %2 {strides = array<i32>} : memref<36x2x32xf32, #tpu.memory_space<vmem>>, vector<36x2x32xf32>,
    return
  }
  func.func @transform_0(%arg0: i32) -> (i32, i32, i32) {
    %c0_i32 = arith.constant 0 : i32
    %c0_i32_0 = arith.constant 0 : i32
    %c0_i32_1 = arith.constant 0 : i32
    return %arg0, %c0_i32, %c0_i32_0 : i32, i32, i32
  }
  func.func @transform_1(%arg0: i32) -> (i32, i32, i32) {
    %c0_i32 = arith.constant 0 : i32
    %c0_i32_0 = arith.constant 0 : i32
    %c0_i32_1 = arith.constant 0 : i32
    return %arg0, %c0_i32, %c0_i32_0 : i32, i32, i32
  }
  func.func @transform_2(%arg0: i32) -> (i32, i32, i32) {
    %c0_i32 = arith.constant 0 : i32
    %c0_i32_0 = arith.constant 0 : i32
    %c0_i32_1 = arith.constant 0 : i32
    return %arg0, %c0_i32, %c0_i32_0 : i32, i32, i32
  }
}

module attributes {stable_mosaic.version = 11 : i64} {
  func.func @kernel(%arg0: i32, %arg1: memref<16x256xf32, #tpu.memory_space<vmem>>, %arg2: memref<16x16xf32, #tpu.memory_space<vmem>>, %arg3: memref<16x1xf32, #tpu.memory_space<vmem>>, %arg4: memref<16x256xf32, #tpu.memory_space<vmem>>, %arg5: memref<16x256xf32, #tpu.memory_space<vmem>>) attributes {dimension_semantics = [#tpu.dimension_semantics<parallel>], iteration_bounds = array<i64: 2>, scalar_prefetch = 0 : i64, scratch_operands = 0 : i64, tpu.core_type = #tpu.core_type<tc>, window_params = [{transform_indices = @transform_0, window_bounds = array<i64: 16, 256>}, {pipeline_mode = #tpu.pipeline_mode<synchronous>, transform_indices = @transform_1, window_bounds = array<i64: 16, 16>}, {pipeline_mode = #tpu.pipeline_mode<synchronous>, transform_indices = @transform_2, window_bounds = array<i64: 16, 1>}, {transform_indices = @transform_3, window_bounds = array<i64: 16, 256>}, {transform_indices = @transform_4, window_bounds = array<i64: 16, 256>}]} {
    %c0 = arith.constant 0 : index
    %c0_0 = arith.constant 0 : index
    %0 = vector.load %arg1[%c0, %c0_0] : memref<16x256xf32, #tpu.memory_space<vmem>>, vector<16x256xf32>
    %c0_1 = arith.constant 0 : index
    %c0_2 = arith.constant 0 : index
    %1 = vector.load %arg2[%c0_1, %c0_2] : memref<16x16xf32, #tpu.memory_space<vmem>>, vector<16x16xf32>
    %c0_3 = arith.constant 0 : index
    %c0_4 = arith.constant 0 : index
    %2 = vector.load %arg3[%c0_3, %c0_4] : memref<16x1xf32, #tpu.memory_space<vmem>>, vector<16x1xf32>
    %c0_5 = arith.constant 0 : index
    %c0_6 = arith.constant 0 : index
    %3 = vector.load %arg4[%c0_5, %c0_6] : memref<16x256xf32, #tpu.memory_space<vmem>>, vector<16x256xf32>
    %cst = arith.constant dense<0.000000e+00> : vector<16x256xf32>
    %4 = tpu.matmul %1, %0, %cst {dimension_numbers = #tpu.dot_dimension_numbers<[1], [0], [0], [1], [0, 0, 1, 1], [], []>} : vector<16x16xf32>, vector<16x256xf32>, vector<16x256xf32> -> vector<16x256xf32>
    %5 = vector.broadcast %2 : vector<16x1xf32> to vector<16x256xf32>
    %6 = arith.addf %4, %5 : vector<16x256xf32>
    %7 = arith.addf %6, %3 : vector<16x256xf32>
    %cst_7 = arith.constant 0.000000e+00 : f32
    %8 = vector.broadcast %cst_7 : f32 to vector<16x256xf32>
    %9 = arith.maximumf %7, %8 : vector<16x256xf32>
    %c0_8 = arith.constant 0 : index
    %c0_9 = arith.constant 0 : index
    %10 = vector.load %arg5[%c0_8, %c0_9] : memref<16x256xf32, #tpu.memory_space<vmem>>, vector<16x256xf32>
    tpu.vector_store %arg5[%c0_8, %c0_9], %9 {strides = array<i32>} : memref<16x256xf32, #tpu.memory_space<vmem>>, vector<16x256xf32>,
    return
  }
  func.func @transform_0(%arg0: i32) -> (i32, i32) {
    %c0_i32 = arith.constant 0 : i32
    %c0_i32_0 = arith.constant 0 : i32
    return %c0_i32, %arg0 : i32, i32
  }
  func.func @transform_1(%arg0: i32) -> (i32, i32) {
    %c0_i32 = arith.constant 0 : i32
    %c0_i32_0 = arith.constant 0 : i32
    %c0_i32_1 = arith.constant 0 : i32
    return %c0_i32, %c0_i32_0 : i32, i32
  }
  func.func @transform_2(%arg0: i32) -> (i32, i32) {
    %c0_i32 = arith.constant 0 : i32
    %c0_i32_0 = arith.constant 0 : i32
    %c0_i32_1 = arith.constant 0 : i32
    return %c0_i32, %c0_i32_0 : i32, i32
  }
  func.func @transform_3(%arg0: i32) -> (i32, i32) {
    %c0_i32 = arith.constant 0 : i32
    %c0_i32_0 = arith.constant 0 : i32
    return %c0_i32, %arg0 : i32, i32
  }
  func.func @transform_4(%arg0: i32) -> (i32, i32) {
    %c0_i32 = arith.constant 0 : i32
    %c0_i32_0 = arith.constant 0 : i32
    return %c0_i32, %arg0 : i32, i32
  }
}

module attributes {stable_mosaic.version = 11 : i64} {
  func.func @kernel(%arg0: i32, %arg1: memref<16x256xf32, #tpu.memory_space<vmem>>, %arg2: memref<16x16xf32, #tpu.memory_space<vmem>>, %arg3: memref<16x1xf32, #tpu.memory_space<vmem>>, %arg4: memref<16x256xf32, #tpu.memory_space<vmem>>, %arg5: memref<16x256xf32, #tpu.memory_space<vmem>>) attributes {dimension_semantics = [#tpu.dimension_semantics<parallel>], iteration_bounds = array<i64: 2>, scalar_prefetch = 0 : i64, scratch_operands = 0 : i64, tpu.core_type = #tpu.core_type<tc>, window_params = [{transform_indices = @transform_0, window_bounds = array<i64: 16, 256>}, {pipeline_mode = #tpu.pipeline_mode<synchronous>, transform_indices = @transform_1, window_bounds = array<i64: 16, 16>}, {pipeline_mode = #tpu.pipeline_mode<synchronous>, transform_indices = @transform_2, window_bounds = array<i64: 16, 1>}, {transform_indices = @transform_3, window_bounds = array<i64: 16, 256>}, {transform_indices = @transform_4, window_bounds = array<i64: 16, 256>}]} {
    %c0 = arith.constant 0 : index
    %c0_0 = arith.constant 0 : index
    %0 = vector.load %arg1[%c0, %c0_0] : memref<16x256xf32, #tpu.memory_space<vmem>>, vector<16x256xf32>
    %c0_1 = arith.constant 0 : index
    %c0_2 = arith.constant 0 : index
    %1 = vector.load %arg2[%c0_1, %c0_2] : memref<16x16xf32, #tpu.memory_space<vmem>>, vector<16x16xf32>
    %c0_3 = arith.constant 0 : index
    %c0_4 = arith.constant 0 : index
    %2 = vector.load %arg3[%c0_3, %c0_4] : memref<16x1xf32, #tpu.memory_space<vmem>>, vector<16x1xf32>
    %c0_5 = arith.constant 0 : index
    %c0_6 = arith.constant 0 : index
    %3 = vector.load %arg4[%c0_5, %c0_6] : memref<16x256xf32, #tpu.memory_space<vmem>>, vector<16x256xf32>
    %cst = arith.constant dense<0.000000e+00> : vector<16x256xf32>
    %4 = tpu.matmul %1, %0, %cst {dimension_numbers = #tpu.dot_dimension_numbers<[1], [0], [0], [1], [0, 0, 1, 1], [], []>} : vector<16x16xf32>, vector<16x256xf32>, vector<16x256xf32> -> vector<16x256xf32>
    %5 = vector.broadcast %2 : vector<16x1xf32> to vector<16x256xf32>
    %6 = arith.addf %4, %5 : vector<16x256xf32>
    %7 = arith.addf %6, %3 : vector<16x256xf32>
    %c0_7 = arith.constant 0 : index
    %c0_8 = arith.constant 0 : index
    %8 = vector.load %arg5[%c0_7, %c0_8] : memref<16x256xf32, #tpu.memory_space<vmem>>, vector<16x256xf32>
    tpu.vector_store %arg5[%c0_7, %c0_8], %7 {strides = array<i32>} : memref<16x256xf32, #tpu.memory_space<vmem>>, vector<16x256xf32>,
    return
  }
  func.func @transform_0(%arg0: i32) -> (i32, i32) {
    %c0_i32 = arith.constant 0 : i32
    %c0_i32_0 = arith.constant 0 : i32
    return %c0_i32, %arg0 : i32, i32
  }
  func.func @transform_1(%arg0: i32) -> (i32, i32) {
    %c0_i32 = arith.constant 0 : i32
    %c0_i32_0 = arith.constant 0 : i32
    %c0_i32_1 = arith.constant 0 : i32
    return %c0_i32, %c0_i32_0 : i32, i32
  }
  func.func @transform_2(%arg0: i32) -> (i32, i32) {
    %c0_i32 = arith.constant 0 : i32
    %c0_i32_0 = arith.constant 0 : i32
    %c0_i32_1 = arith.constant 0 : i32
    return %c0_i32, %c0_i32_0 : i32, i32
  }
  func.func @transform_3(%arg0: i32) -> (i32, i32) {
    %c0_i32 = arith.constant 0 : i32
    %c0_i32_0 = arith.constant 0 : i32
    return %c0_i32, %arg0 : i32, i32
  }
  func.func @transform_4(%arg0: i32) -> (i32, i32) {
    %c0_i32 = arith.constant 0 : i32
    %c0_i32_0 = arith.constant 0 : i32
    return %c0_i32, %arg0 : i32, i32
  }
}

module attributes {stable_mosaic.version = 11 : i64} {
  func.func @_head_kernel(%arg0: i32, %arg1: memref<16x256xf32, #tpu.memory_space<vmem>>, %arg2: memref<128x16xf32, #tpu.memory_space<vmem>>, %arg3: memref<128x1xf32, #tpu.memory_space<vmem>>, %arg4: memref<128x1xf32, #tpu.memory_space<vmem>>, %arg5: memref<1x1xf32, #tpu.memory_space<vmem>>, %arg6: memref<1x256xf32, #tpu.memory_space<vmem>>) attributes {dimension_semantics = [#tpu.dimension_semantics<parallel>], iteration_bounds = array<i64: 2>, scalar_prefetch = 0 : i64, scratch_operands = 0 : i64, tpu.core_type = #tpu.core_type<tc>, window_params = [{transform_indices = @transform_0, window_bounds = array<i64: 16, 256>}, {pipeline_mode = #tpu.pipeline_mode<synchronous>, transform_indices = @transform_1, window_bounds = array<i64: 128, 16>}, {pipeline_mode = #tpu.pipeline_mode<synchronous>, transform_indices = @transform_2, window_bounds = array<i64: 128, 1>}, {pipeline_mode = #tpu.pipeline_mode<synchronous>, transform_indices = @transform_3, window_bounds = array<i64: 128, 1>}, {pipeline_mode = #tpu.pipeline_mode<synchronous>, transform_indices = @transform_4, window_bounds = array<i64: 1, 1>}, {transform_indices = @transform_5, window_bounds = array<i64: 1, 256>}]} {
    %c0 = arith.constant 0 : index
    %c0_0 = arith.constant 0 : index
    %0 = vector.load %arg2[%c0, %c0_0] : memref<128x16xf32, #tpu.memory_space<vmem>>, vector<128x16xf32>
    %c0_1 = arith.constant 0 : index
    %c0_2 = arith.constant 0 : index
    %1 = vector.load %arg1[%c0_1, %c0_2] : memref<16x256xf32, #tpu.memory_space<vmem>>, vector<16x256xf32>
    %cst = arith.constant dense<0.000000e+00> : vector<128x256xf32>
    %2 = tpu.matmul %0, %1, %cst {dimension_numbers = #tpu.dot_dimension_numbers<[1], [0], [0], [1], [0, 0, 1, 1], [], []>} : vector<128x16xf32>, vector<16x256xf32>, vector<128x256xf32> -> vector<128x256xf32>
    %c0_3 = arith.constant 0 : index
    %c0_4 = arith.constant 0 : index
    %3 = vector.load %arg3[%c0_3, %c0_4] : memref<128x1xf32, #tpu.memory_space<vmem>>, vector<128x1xf32>
    %4 = vector.broadcast %3 : vector<128x1xf32> to vector<128x256xf32>
    %5 = arith.addf %2, %4 : vector<128x256xf32>
    %cst_5 = arith.constant 0.000000e+00 : f32
    %6 = vector.broadcast %cst_5 : f32 to vector<128x256xf32>
    %7 = arith.maximumf %5, %6 : vector<128x256xf32>
    %c0_6 = arith.constant 0 : index
    %c0_7 = arith.constant 0 : index
    %8 = vector.load %arg4[%c0_6, %c0_7] : memref<128x1xf32, #tpu.memory_space<vmem>>, vector<128x1xf32>
    %9 = vector.broadcast %8 : vector<128x1xf32> to vector<128x256xf32>
    %10 = arith.mulf %7, %9 : vector<128x256xf32>
    %cst_8 = arith.constant dense<0.000000e+00> : vector<256xf32>
    %11 = vector.multi_reduction <add>, %10, %cst_8 [0] : vector<128x256xf32> to vector<256xf32>
    %12 = vector.shape_cast %11 : vector<256xf32> to vector<1x256xf32>
    %c0_9 = arith.constant 0 : index
    %c0_10 = arith.constant 0 : index
    %13 = vector.load %arg5[%c0_9, %c0_10] : memref<1x1xf32, #tpu.memory_space<vmem>>, vector<1x1xf32>
    %14 = vector.broadcast %13 : vector<1x1xf32> to vector<1x256xf32>
    %15 = arith.addf %12, %14 : vector<1x256xf32>
    %c0_11 = arith.constant 0 : index
    %c0_12 = arith.constant 0 : index
    %16 = vector.load %arg6[%c0_11, %c0_12] : memref<1x256xf32, #tpu.memory_space<vmem>>, vector<1x256xf32>
    tpu.vector_store %arg6[%c0_11, %c0_12], %15 {strides = array<i32>} : memref<1x256xf32, #tpu.memory_space<vmem>>, vector<1x256xf32>,
    return
  }
  func.func @transform_0(%arg0: i32) -> (i32, i32) {
    %c0_i32 = arith.constant 0 : i32
    %c0_i32_0 = arith.constant 0 : i32
    return %c0_i32, %arg0 : i32, i32
  }
  func.func @transform_1(%arg0: i32) -> (i32, i32) {
    %c0_i32 = arith.constant 0 : i32
    %c0_i32_0 = arith.constant 0 : i32
    %c0_i32_1 = arith.constant 0 : i32
    return %c0_i32, %c0_i32_0 : i32, i32
  }
  func.func @transform_2(%arg0: i32) -> (i32, i32) {
    %c0_i32 = arith.constant 0 : i32
    %c0_i32_0 = arith.constant 0 : i32
    %c0_i32_1 = arith.constant 0 : i32
    return %c0_i32, %c0_i32_0 : i32, i32
  }
  func.func @transform_3(%arg0: i32) -> (i32, i32) {
    %c0_i32 = arith.constant 0 : i32
    %c0_i32_0 = arith.constant 0 : i32
    %c0_i32_1 = arith.constant 0 : i32
    return %c0_i32, %c0_i32_0 : i32, i32
  }
  func.func @transform_4(%arg0: i32) -> (i32, i32) {
    %c0_i32 = arith.constant 0 : i32
    %c0_i32_0 = arith.constant 0 : i32
    %c0_i32_1 = arith.constant 0 : i32
    return %c0_i32, %c0_i32_0 : i32, i32
  }
  func.func @transform_5(%arg0: i32) -> (i32, i32) {
    %c0_i32 = arith.constant 0 : i32
    %c0_i32_0 = arith.constant 0 : i32
    return %c0_i32, %arg0 : i32, i32
  }
}

</mosaic_0001>

<bundles_post_ra>
// kernel: fno2d_forward.10
= control target key start
LH: loop header
LB: loop body
LE: loop exit
PB: predicated region body
PF: predicated region fallthrough
CT: control target
= control target key end

     0   :  { %s425_s12 = smov 0   ;;  %s427_s13 = smov 0   ;;  %s487_s0 = inlined_call_operand.vmem [shape: f32[3,512], index: 0, kind: input, shape index: {}]   ;;  %s488_s1 = inlined_call_operand.vmem [shape: f32[16,3], index: 1, kind: input, shape index: {}]   ;;  %s489_s2 = inlined_call_operand.vmem [shape: f32[16,1], index: 2, kind: input, shape index: {}]   ;;  %s490_s3 = inlined_call_operand.vmem [shape: f32[16,512], index: 3, kind: output, shape index: {}]  }
   0x1   :  { %s429_s14 = smov 0  }
   0x2 LB: > { %s438_s15 = sadd.s32 4294967295, %s402_s14   ;;  %s440_s16 = sadd.s32 1, %s402_s14   ;;  %s402_s14 = sphi %s429_s14, %s494_s14   ;;  %s398_s13 = sphi %s427_s13, %s493_s13   ;;  %s394_s12 = sphi %s425_s12, %s492_s12  }
   0x3   : > { %s85_s17 = ssub.s32 %s402_s14, %s440_s16  ;;  %s88_s18 = sadd.s32 1, %s398_s13 }
   0x4   : > { %p86_p0 = scmp.eq.s32.totalorder %s85_s17, 0  ;;  %p98_p1 = scmp.ne.s32.totalorder %s398_s13, %s394_s12 }
   0x5   : > { %p99_p2 = scmp.eq.s32.totalorder %s438_s15, 1  ;;  %p336_p3 = scmp.ge.s32.totalorder %s402_s14, 1 }
   0x6   : > { %s448_s19 = scalar_select %p86_p0, %s398_s13, %s88_s18  }
   0x7   : > { %p450_p4 = por %p99_p2, %p98_p1  ;;  %p138_p5 = scmp.lt.s32.totalorder %s402_s14, 3 }
   0x9   : > { %p139_p6 = pnand %p336_p3, %p138_p5 }
   0xa   : > { %s338_s21 = sshll.u32 (!%p139_p6), %s438_s15, 1  ;;  %s158_s7 = sand.u32 (!%p139_p6), 1, %s394_s12  }
   0xb   : > { %142 = sbr.rel (%p139_p6) target bundleno = 174 (0xae), region = 32  ;;  %p162_p7 = scmp.lt.s32.totalorder (!%p139_p6), %s338_s21, 3 }
   0xc   : > { %s337_s8 = sshll.u32 (!%p139_p6), %s158_s7, 5 }
   0xd   : > { %s160_s9 = scalar_lea.vmem (!%p139_p6), [#allocation2], %s337_s8 }
  0x10   : > { %v404_v0 = vmov 0   ;;  %v171_v1 = vld [vmem:[%s489_s2] sm:$0xff]  ;;  %s496_s21 = smov (!%p162_p7, %s338_s21), 3  ;;  %v172_v3 = vld [vmem:[%s489_s2 + $0x8] sm:$0xff]  ;;  %vm194_vm0 = vcmask 1042432   ;;  %vm187_vm1 = vcmask 23552  }
  0x11   : > { %379 = vset.pattern.permute.xlu0 %v404_v0  ;;  %s339_s24 = sshll.u32 %s496_s21, 2  ;;  %v169_v4 = vld [vmem:[%s488_s1] sm:$0xff]  ;;  %v170_v5 = vld [vmem:[%s488_s1 + $0x8] sm:$0xff]  ;;  %s351_s10 = sshll.u32 (%p450_p4), %s438_s15, 4 }
  0x12   : > { %175 = vperm.xlu0 %379, %v171_v1   ;;  %s165_s27 = scalar_lea.vmem %s487_s0, %s339_s24  ;;  %s258_s14 = scalar_lea.vmem (%p450_p4), %s490_s3, %s351_s10 }
  0x13   : > { %v168_v2 = vld [vmem:[%s165_s27] sm:$0x77] }
  0x14   : > { %184 = vst [vmem:[#allocation1] ss:$2 sm:$0xff] %v168_v2 }
  0x1a   : > { %180 = vperm.xlu0 %379, %v172_v3  }
  0x1b   : > { %v185_v6 = vld.sshfl [vmem:[#allocation1] sm:$0xff pattern:$0x75316420]  ;;  %v186_v7 = vld.sshfl [vmem:[#allocation1 + $0x8] sm:$0xff pattern:$0x75316420] }
  0x1c   : > { %340 = vmatpush.msk.msra.mxu0 %vm194_vm0, %v185_v6  ;;  %352 = vmatpush.msk.msra.mxu2 %vm194_vm0, %v185_v6 }
  0x1d   : > { %343 = vmatpush.msk.msra.mxu1 %vm194_vm0, %v186_v7  ;;  %353 = vmatpush.msk.msra.mxu3 %vm194_vm0, %v186_v7 }
  0x1e   : > { %341 = vmatmul.msk.f32.vlgmr.msra.gmra.mxu0 %vm187_vm1, %v169_v4  ;;  %342 = vmatmul.msk.f32.vlgmr.msra.gmra.mxu2 %vm187_vm1, %v170_v5 }
  0x1f   : > { %344 = vmatmul.msk.f32.vlgmr.msra.gmra.mxu1 %vm187_vm1, %v169_v4  ;;  %345 = vmatmul.msk.f32.vlgmr.msra.gmra.mxu3 %vm187_vm1, %v170_v5 }
  0x84   : > { %v176_v8 = vpop.permute.xlu0 %175 }
  0x8c   : > { %v181_v13 = vpop.permute.xlu0 %180 }
  0x9b   : > { %v216_v9 = vpop.f32.mrf.mxu0 }
  0x9c   : > { %v217_v10 = vadd.f32 %v216_v9, %v176_v8  ;;  %v239_v11 = vpop.f32.mrf.mxu1 }
  0x9d   : > { %v240_v12 = vadd.f32 %v239_v11, %v176_v8 }
  0x9e   : > { %245 = vst [vmem:[%s160_s9] sm:$0xff] %v217_v10 }
  0x9f   : > { %246 = vst [vmem:[%s160_s9 + $0x8] sm:$0xff] %v240_v12 }
  0xa1   : > { %v219_v14 = vpop.f32.mrf.mxu2  ;;  %255 = sbr.rel (!%p450_p4) target bundleno = 174 (0xae), region = 36 }
  0xa2   : > { %v220_v15 = vadd.f32 %v219_v14, %v181_v13  ;;  %v242_v16 = vpop.f32.mrf.mxu3 }
  0xa3   : > { %v243_v17 = vadd.f32 %v242_v16, %v181_v13 }
  0xa4   : > { %247 = vst [vmem:[%s160_s9 + $0x10] sm:$0xff] %v220_v15 }
  0xa5   : > { %248 = vst [vmem:[%s160_s9 + $0x18] sm:$0xff] %v243_v17  ;;  %v271_v18 = vld [vmem:[%s160_s9] sm:$0xff] (%p450_p4) }
  0xa6   : > { %v273_v19 = vld [vmem:[%s160_s9 + $0x8] sm:$0xff]  ;;  %272 = vst [vmem:[%s258_s14] sm:$0xff] %v271_v18 }
  0xa7   : > { %274 = vst [vmem:[%s258_s14 + $0x8] sm:$0xff] %v273_v19 }
  0xab   : > { %v275_v20 = vld [vmem:[%s160_s9 + $0x10] sm:$0xff] }
  0xac   : > { %v277_v21 = vld [vmem:[%s160_s9 + $0x18] sm:$0xff]  ;;  %276 = vst [vmem:[%s258_s14 + $0x20] sm:$0xff] %v275_v20 }
  0xad   : > { %278 = vst [vmem:[%s258_s14 + $0x28] sm:$0xff] %v277_v21 }
  0xae PF: > { %p10_p8 = scmp.ge.s32.totalorder %s440_s16, 4   ;;  %s492_s12 = smov %s398_s13 }
  0xaf   : > { %s493_s13 = smov %s448_s19  ;;  %s494_s14 = smov %s440_s16 }
  0xb0   :  { %12 = sbr.rel (!%p10_p8) target bundleno = 2 (0x2), region = 85 }

// kernel: fno2d_forward.11
= control target key start
LH: loop header
LB: loop body
LE: loop exit
PB: predicated region body
PF: predicated region fallthrough
CT: control target
= control target key end

     0   :  { %s1365_s9 = smov 0   ;;  %s1687_s0 = inlined_call_operand.vmem [shape: f32[72,2,32], index: 0, kind: input, shape index: {}]   ;;  %s1688_s1 = inlined_call_operand.vmem [shape: f32[72,32,32], index: 1, kind: input, shape index: {}]   ;;  %s1689_s2 = inlined_call_operand.vmem [shape: f32[72,2,32], index: 2, kind: output, shape index: {}]  }
   0x1 LB: > { %s1286_s10 = sadd.s32 4294967295, %s1348_s9   ;;  %p1290_p0 = scmp.ge.s32.totalorder %s1348_s9, 1  ;;  %s1348_s9 = sphi %s1365_s9, %s12_s9  }
   0x2   : > { %p125_p1 = scmp.lt.s32.totalorder %s1348_s9, 3 }
   0x4   : > { %p126_p2 = pnand %p1290_p0, %p125_p1 }
   0x5   : > { %s153_s11 = smul.u32 (!%p126_p2), 36, %s1286_s10 }
   0x6   : > { %129 = sbr.rel (%p126_p2) target bundleno = 236 (0xec), region = 28 }
   0x7   : > { %p154_p3 = scmp.lt.s32.totalorder (!%p126_p2), %s153_s11, 71 }
   0xb   : > { %s1691_s11 = smov (!%p154_p3, %s153_s11), 71  ;;  %vm352_vm0 = vcmask 261120   ;;  %vm1181_vm1 = vcmask 254976  }
   0xc   : > { %s1333_s12 = sshll.u32 %s1691_s11, 5  ;;  %s1291_s16 = sshll.u32 %s1691_s11, 1 }
   0xd   : > { %s1379_s15 = scalar_lea.vmem %s1688_s1, %s1333_s12  ;;  %s1395_s19 = scalar_lea.vmem %s1687_s0, %s1291_s16 }
   0xe   : > { %v219_v0 = vld [vmem:[%s1379_s15 + $0x58] sm:$0xff]  ;;  %v218_v2 = vld [vmem:[%s1379_s15 + $0x50] sm:$0xff]  ;;  %v217_v4 = vld [vmem:[%s1379_s15 + $0x48] sm:$0xff]  ;;  %s1610_s22 = scalar_lea.vmem %s1689_s2, %s1291_s16 }
   0xf   : > { %v223_v1 = vld [vmem:[%s1379_s15 + $0x78] sm:$0xff]  ;;  %414 = vmatpush.msra.mxu2 %v219_v0  ;;  %v222_v3 = vld [vmem:[%s1379_s15 + $0x70] sm:$0xff]  ;;  %v221_v5 = vld [vmem:[%s1379_s15 + $0x68] sm:$0xff] }
  0x10   : > { %437 = vmatpush.msra.mxu3 %v223_v1  ;;  %v211_v6 = vld [vmem:[%s1379_s15 + $0x18] sm:$0xff]  ;;  %v216_v8 = vld [vmem:[%s1379_s15 + $0x40] sm:$0xff]  ;;  %v210_v10 = vld [vmem:[%s1379_s15 + $0x10] sm:$0xff] }
  0x11   : > { %v215_v7 = vld [vmem:[%s1379_s15 + $0x38] sm:$0xff]  ;;  %415 = vmatpush.msra.mxu2 %v218_v2  ;;  %368 = vmatpush.msra.mxu0 %v211_v6  ;;  %v220_v9 = vld [vmem:[%s1379_s15 + $0x60] sm:$0xff]  ;;  %v214_v13 = vld [vmem:[%s1379_s15 + $0x30] sm:$0xff] }
  0x12   : > { %438 = vmatpush.msra.mxu3 %v222_v3  ;;  %391 = vmatpush.msra.mxu1 %v215_v7  ;;  %v174_v11 = vld [vmem:[%s1395_s19 + $0x4] sm:$0x3]  ;;  %v175_v12 = vld [vmem:[%s1395_s19 + $0x6] sm:$0x3]  ;;  %v235_v14 = vld [vmem:[%s1379_s15 + $0xd8] sm:$0xff] }
  0x13   : > { %416 = vmatpush.msra.mxu2 %v217_v4  ;;  %v239_v15 = vld [vmem:[%s1379_s15 + $0xf8] sm:$0xff]  ;;  %369 = vmatpush.msra.mxu0 %v210_v10  ;;  %v209_v16 = vld [vmem:[%s1379_s15 + $0x8] sm:$0xff]  ;;  %v234_v18 = vld [vmem:[%s1379_s15 + $0xd0] sm:$0xff] }
  0x14   : > { %439 = vmatpush.msra.mxu3 %v221_v5  ;;  %392 = vmatpush.msra.mxu1 %v214_v13  ;;  %v213_v17 = vld [vmem:[%s1379_s15 + $0x28] sm:$0xff]  ;;  %v238_v19 = vld [vmem:[%s1379_s15 + $0xf0] sm:$0xff]  ;;  %v208_v20 = vld [vmem:[%s1379_s15] sm:$0xff] }
  0x15   : > { %417 = vmatpush.msra.mxu2 %v216_v8  ;;  %v212_v21 = vld [vmem:[%s1379_s15 + $0x20] sm:$0xff]  ;;  %370 = vmatpush.msra.mxu0 %v209_v16  ;;  %v233_v22 = vld [vmem:[%s1379_s15 + $0xc8] sm:$0xff]  ;;  %v227_v26 = vld [vmem:[%s1379_s15 + $0x98] sm:$0xff] }
  0x16   : > { %440 = vmatpush.msra.mxu3 %v220_v9  ;;  %1297 = vmatmul.msk.f32.vlgmr.msra.gmra.mxu2 %vm352_vm0, %v174_v11  ;;  %v237_v23 = vld [vmem:[%s1379_s15 + $0xe8] sm:$0xff]  ;;  %v172_v24 = vld [vmem:[%s1395_s19] sm:$0x3]  ;;  %v173_v25 = vld [vmem:[%s1395_s19 + $0x2] sm:$0x3] }
  0x17   : > { %1298 = vmatmul.msk.f32.vlgmr.msra.gmra.mxu3 %vm352_vm0, %v175_v12  ;;  %506 = vmatpush.msrb.mxu2 %v235_v14  ;;  %v231_v27 = vld [vmem:[%s1379_s15 + $0xb8] sm:$0xff]  ;;  %v232_v28 = vld [vmem:[%s1379_s15 + $0xc0] sm:$0xff]  ;;  %v226_v30 = vld [vmem:[%s1379_s15 + $0x90] sm:$0xff] }
  0x18   : > { %529 = vmatpush.msrb.mxu3 %v239_v15  ;;  %393 = vmatpush.msra.mxu1 %v213_v17  ;;  %v236_v29 = vld [vmem:[%s1379_s15 + $0xe0] sm:$0xff]  ;;  %v230_v31 = vld [vmem:[%s1379_s15 + $0xb0] sm:$0xff]  ;;  %v178_v32 = vld [vmem:[%s1395_s19 + $0xc] sm:$0x3] }
  0x19   : > { %507 = vmatpush.msrb.mxu2 %v234_v18  ;;  %371 = vmatpush.msra.mxu0 %v208_v20  ;;  %v179_v33 = vld [vmem:[%s1395_s19 + $0xe] sm:$0x3]  ;;  %v251_v34 = vld [vmem:[%s1379_s15 + $0x158] sm:$0xff]  ;;  %v250_v38 = vld [vmem:[%s1379_s15 + $0x150] sm:$0xff] }
  0x1a   : > { %530 = vmatpush.msrb.mxu3 %v238_v19  ;;  %394 = vmatpush.msra.mxu1 %v212_v21  ;;  %v255_v35 = vld [vmem:[%s1379_s15 + $0x178] sm:$0xff]  ;;  %v225_v36 = vld [vmem:[%s1379_s15 + $0x88] sm:$0xff]  ;;  %v254_v39 = vld [vmem:[%s1379_s15 + $0x170] sm:$0xff] }
  0x1b   : > { %508 = vmatpush.msrb.mxu2 %v233_v22  ;;  %1295 = vmatmul.msk.f32.vlgmr.msra.gmra.mxu0 %vm352_vm0, %v172_v24  ;;  %v229_v37 = vld [vmem:[%s1379_s15 + $0xa8] sm:$0xff]  ;;  %v224_v40 = vld [vmem:[%s1379_s15 + $0x80] sm:$0xff]  ;;  %v243_v46 = vld [vmem:[%s1379_s15 + $0x118] sm:$0xff] }
  0x1c   : > { %531 = vmatpush.msrb.mxu3 %v237_v23  ;;  %1296 = vmatmul.msk.f32.vlgmr.msra.gmra.mxu1 %vm352_vm0, %v173_v25  ;;  %v228_v41 = vld [vmem:[%s1379_s15 + $0xa0] sm:$0xff]  ;;  %v249_v42 = vld [vmem:[%s1379_s15 + $0x148] sm:$0xff]  ;;  %v247_v47 = vld [vmem:[%s1379_s15 + $0x138] sm:$0xff] }
  0x1d   : > { %460 = vmatpush.msrb.mxu0 %v227_v26  ;;  %483 = vmatpush.msrb.mxu1 %v231_v27  ;;  %v253_v43 = vld [vmem:[%s1379_s15 + $0x168] sm:$0xff]  ;;  %v248_v48 = vld [vmem:[%s1379_s15 + $0x140] sm:$0xff]  ;;  %v242_v50 = vld [vmem:[%s1379_s15 + $0x110] sm:$0xff] }
  0x1e   : > { %509 = vmatpush.msrb.mxu2 %v232_v28  ;;  %532 = vmatpush.msrb.mxu3 %v236_v29  ;;  %v176_v44 = vld [vmem:[%s1395_s19 + $0x8] sm:$0x3]  ;;  %v177_v45 = vld [vmem:[%s1395_s19 + $0xa] sm:$0x3]  ;;  %v252_v49 = vld [vmem:[%s1379_s15 + $0x160] sm:$0xff] }
  0x1f   : > { %461 = vmatpush.msrb.mxu0 %v226_v30  ;;  %484 = vmatpush.msrb.mxu1 %v230_v31  ;;  %v246_v51 = vld [vmem:[%s1379_s15 + $0x130] sm:$0xff]  ;;  %v267_v54 = vld [vmem:[%s1379_s15 + $0x1d8] sm:$0xff]  ;;  %v241_v56 = vld [vmem:[%s1379_s15 + $0x108] sm:$0xff] }
  0x20   : > { %1301 = vmatmul.msk.f32.vlgmr.msrb.gmra.mxu2 %vm352_vm0, %v178_v32  ;;  %1302 = vmatmul.msk.f32.vlgmr.msrb.gmra.mxu3 %vm352_vm0, %v179_v33  ;;  %v182_v52 = vld [vmem:[%s1395_s19 + $0x14] sm:$0x3]  ;;  %v183_v53 = vld [vmem:[%s1395_s19 + $0x16] sm:$0x3]  ;;  %v271_v55 = vld [vmem:[%s1379_s15 + $0x1f8] sm:$0xff] }
  0x21   : > { %598 = vmatpush.msra.mxu2 %v251_v34  ;;  %621 = vmatpush.msra.mxu3 %v255_v35  ;;  %v245_v57 = vld [vmem:[%s1379_s15 + $0x128] sm:$0xff]  ;;  %v266_v58 = vld [vmem:[%s1379_s15 + $0x1d0] sm:$0xff]  ;;  %v240_v60 = vld [vmem:[%s1379_s15 + $0x100] sm:$0xff] }
  0x22   : > { %462 = vmatpush.msrb.mxu0 %v225_v36  ;;  %485 = vmatpush.msrb.mxu1 %v229_v37  ;;  %v270_v59 = vld [vmem:[%s1379_s15 + $0x1f0] sm:$0xff]  ;;  %v244_v61 = vld [vmem:[%s1379_s15 + $0x120] sm:$0xff]  ;;  %v265_v62 = vld [vmem:[%s1379_s15 + $0x1c8] sm:$0xff] }
  0x23   : > { %599 = vmatpush.msra.mxu2 %v250_v38  ;;  %622 = vmatpush.msra.mxu3 %v254_v39  ;;  %v269_v63 = vld [vmem:[%s1379_s15 + $0x1e8] sm:$0xff]  ;;  %v180_v0 = vld [vmem:[%s1395_s19 + $0x10] sm:$0x3]  ;;  %v181_v1 = vld [vmem:[%s1395_s19 + $0x12] sm:$0x3] }
  0x24   : > { %463 = vmatpush.msrb.mxu0 %v224_v40  ;;  %486 = vmatpush.msrb.mxu1 %v228_v41  ;;  %v259_v2 = vld [vmem:[%s1379_s15 + $0x198] sm:$0xff]  ;;  %v264_v4 = vld [vmem:[%s1379_s15 + $0x1c0] sm:$0xff]  ;;  %v258_v6 = vld [vmem:[%s1379_s15 + $0x190] sm:$0xff] }
  0x25   : > { %600 = vmatpush.msra.mxu2 %v249_v42  ;;  %623 = vmatpush.msra.mxu3 %v253_v43  ;;  %v263_v3 = vld [vmem:[%s1379_s15 + $0x1b8] sm:$0xff]  ;;  %v268_v5 = vld [vmem:[%s1379_s15 + $0x1e0] sm:$0xff]  ;;  %v262_v7 = vld [vmem:[%s1379_s15 + $0x1b0] sm:$0xff] }
  0x26   : > { %1299 = vmatmul.msk.f32.vlgmr.msrb.gmra.mxu0 %vm352_vm0, %v176_v44  ;;  %1300 = vmatmul.msk.f32.vlgmr.msrb.gmra.mxu1 %vm352_vm0, %v177_v45  ;;  %v186_v8 = vld [vmem:[%s1395_s19 + $0x1c] sm:$0x3]  ;;  %v187_v9 = vld [vmem:[%s1395_s19 + $0x1e] sm:$0x3]  ;;  %v257_v12 = vld [vmem:[%s1379_s15 + $0x188] sm:$0xff] }
  0x27   : > { %552 = vmatpush.msra.mxu0 %v243_v46  ;;  %575 = vmatpush.msra.mxu1 %v247_v47  ;;  %v283_v10 = vld [vmem:[%s1379_s15 + $0x258] sm:$0xff]  ;;  %v261_v13 = vld [vmem:[%s1379_s15 + $0x1a8] sm:$0xff]  ;;  %v282_v14 = vld [vmem:[%s1379_s15 + $0x250] sm:$0xff] }
  0x28   : > { %601 = vmatpush.msra.mxu2 %v248_v48  ;;  %624 = vmatpush.msra.mxu3 %v252_v49  ;;  %v287_v11 = vld [vmem:[%s1379_s15 + $0x278] sm:$0xff]  ;;  %v286_v15 = vld [vmem:[%s1379_s15 + $0x270] sm:$0xff]  ;;  %v256_v16 = vld [vmem:[%s1379_s15 + $0x180] sm:$0xff] }
  0x29   : > { %553 = vmatpush.msra.mxu0 %v242_v50  ;;  %576 = vmatpush.msra.mxu1 %v246_v51  ;;  %v260_v17 = vld [vmem:[%s1379_s15 + $0x1a0] sm:$0xff]  ;;  %v281_v18 = vld [vmem:[%s1379_s15 + $0x248] sm:$0xff]  ;;  %v184_v20 = vld [vmem:[%s1395_s19 + $0x18] sm:$0x3] }
  0x2a   : > { %1305 = vmatmul.msk.f32.vlgmr.msra.gmra.mxu2 %vm352_vm0, %v182_v52  ;;  %1306 = vmatmul.msk.f32.vlgmr.msra.gmra.mxu3 %vm352_vm0, %v183_v53  ;;  %v285_v19 = vld [vmem:[%s1379_s15 + $0x268] sm:$0xff]  ;;  %v185_v21 = vld [vmem:[%s1395_s19 + $0x1a] sm:$0x3]  ;;  %v280_v24 = vld [vmem:[%s1379_s15 + $0x240] sm:$0xff] }
  0x2b   : > { %690 = vmatpush.msrb.mxu2 %v267_v54  ;;  %713 = vmatpush.msrb.mxu3 %v271_v55  ;;  %v275_v22 = vld [vmem:[%s1379_s15 + $0x218] sm:$0xff]  ;;  %v284_v25 = vld [vmem:[%s1379_s15 + $0x260] sm:$0xff]  ;;  %v274_v26 = vld [vmem:[%s1379_s15 + $0x210] sm:$0xff] }
  0x2c   : > { %554 = vmatpush.msra.mxu0 %v241_v56  ;;  %577 = vmatpush.msra.mxu1 %v245_v57  ;;  %v279_v23 = vld [vmem:[%s1379_s15 + $0x238] sm:$0xff]  ;;  %v278_v27 = vld [vmem:[%s1379_s15 + $0x230] sm:$0xff]  ;;  %v190_v28 = vld [vmem:[%s1395_s19 + $0x24] sm:$0x3] }
  0x2d   : > { %691 = vmatpush.msrb.mxu2 %v266_v58  ;;  %714 = vmatpush.msrb.mxu3 %v270_v59  ;;  %v191_v29 = vld [vmem:[%s1395_s19 + $0x26] sm:$0x3]  ;;  %v299_v30 = vld [vmem:[%s1379_s15 + $0x2d8] sm:$0xff]  ;;  %v273_v32 = vld [vmem:[%s1379_s15 + $0x208] sm:$0xff] }
  0x2e   : > { %555 = vmatpush.msra.mxu0 %v240_v60  ;;  %578 = vmatpush.msra.mxu1 %v244_v61  ;;  %v303_v31 = vld [vmem:[%s1379_s15 + $0x2f8] sm:$0xff]  ;;  %v277_v33 = vld [vmem:[%s1379_s15 + $0x228] sm:$0xff]  ;;  %v298_v34 = vld [vmem:[%s1379_s15 + $0x2d0] sm:$0xff] }
  0x2f   : > { %692 = vmatpush.msrb.mxu2 %v265_v62  ;;  %715 = vmatpush.msrb.mxu3 %v269_v63  ;;  %v302_v35 = vld [vmem:[%s1379_s15 + $0x2f0] sm:$0xff]  ;;  %v272_v36 = vld [vmem:[%s1379_s15 + $0x200] sm:$0xff]  ;;  %v297_v38 = vld [vmem:[%s1379_s15 + $0x2c8] sm:$0xff] }
  0x30   : > { %1303 = vmatmul.msk.f32.vlgmr.msra.gmra.mxu0 %vm352_vm0, %v180_v0  ;;  %1304 = vmatmul.msk.f32.vlgmr.msra.gmra.mxu1 %vm352_vm0, %v181_v1  ;;  %v276_v37 = vld [vmem:[%s1379_s15 + $0x220] sm:$0xff]  ;;  %v301_v39 = vld [vmem:[%s1379_s15 + $0x2e8] sm:$0xff]  ;;  %v291_v42 = vld [vmem:[%s1379_s15 + $0x298] sm:$0xff] }
  0x31   : > { %644 = vmatpush.msrb.mxu0 %v259_v2  ;;  %667 = vmatpush.msrb.mxu1 %v263_v3  ;;  %v188_v40 = vld [vmem:[%s1395_s19 + $0x20] sm:$0x3]  ;;  %v189_v41 = vld [vmem:[%s1395_s19 + $0x22] sm:$0x3]  ;;  %v295_v43 = vld [vmem:[%s1379_s15 + $0x2b8] sm:$0xff] }
  0x32   : > { %693 = vmatpush.msrb.mxu2 %v264_v4  ;;  %716 = vmatpush.msrb.mxu3 %v268_v5  ;;  %v296_v44 = vld [vmem:[%s1379_s15 + $0x2c0] sm:$0xff]  ;;  %v290_v46 = vld [vmem:[%s1379_s15 + $0x290] sm:$0xff]  ;;  %v194_v48 = vld [vmem:[%s1395_s19 + $0x2c] sm:$0x3] }
  0x33   : > { %645 = vmatpush.msrb.mxu0 %v258_v6  ;;  %668 = vmatpush.msrb.mxu1 %v262_v7  ;;  %v300_v45 = vld [vmem:[%s1379_s15 + $0x2e0] sm:$0xff]  ;;  %v294_v47 = vld [vmem:[%s1379_s15 + $0x2b0] sm:$0xff]  ;;  %v195_v49 = vld [vmem:[%s1395_s19 + $0x2e] sm:$0x3] }
  0x34   : > { %1309 = vmatmul.msk.f32.vlgmr.msrb.gmra.mxu2 %vm352_vm0, %v186_v8  ;;  %1310 = vmatmul.msk.f32.vlgmr.msrb.gmra.mxu3 %vm352_vm0, %v187_v9  ;;  %v315_v50 = vld [vmem:[%s1379_s15 + $0x358] sm:$0xff]  ;;  %v289_v52 = vld [vmem:[%s1379_s15 + $0x288] sm:$0xff]  ;;  %v314_v54 = vld [vmem:[%s1379_s15 + $0x350] sm:$0xff] }
  0x35   : > { %782 = vmatpush.msra.mxu2 %v283_v10  ;;  %805 = vmatpush.msra.mxu3 %v287_v11  ;;  %v319_v51 = vld [vmem:[%s1379_s15 + $0x378] sm:$0xff]  ;;  %v293_v53 = vld [vmem:[%s1379_s15 + $0x2a8] sm:$0xff]  ;;  %v318_v55 = vld [vmem:[%s1379_s15 + $0x370] sm:$0xff] }
  0x36   : > { %646 = vmatpush.msrb.mxu0 %v257_v12  ;;  %669 = vmatpush.msrb.mxu1 %v261_v13  ;;  %v288_v56 = vld [vmem:[%s1379_s15 + $0x280] sm:$0xff]  ;;  %v313_v58 = vld [vmem:[%s1379_s15 + $0x348] sm:$0xff]  ;;  %v307_v62 = vld [vmem:[%s1379_s15 + $0x318] sm:$0xff] }
  0x37   : > { %783 = vmatpush.msra.mxu2 %v282_v14  ;;  %806 = vmatpush.msra.mxu3 %v286_v15  ;;  %v292_v57 = vld [vmem:[%s1379_s15 + $0x2a0] sm:$0xff]  ;;  %v317_v59 = vld [vmem:[%s1379_s15 + $0x368] sm:$0xff]  ;;  %v311_v63 = vld [vmem:[%s1379_s15 + $0x338] sm:$0xff] }
  0x38   : > { %647 = vmatpush.msrb.mxu0 %v256_v16  ;;  %670 = vmatpush.msrb.mxu1 %v260_v17  ;;  %v192_v60 = vld [vmem:[%s1395_s19 + $0x28] sm:$0x3]  ;;  %v193_v61 = vld [vmem:[%s1395_s19 + $0x2a] sm:$0x3]  ;;  %v312_v0 = vld [vmem:[%s1379_s15 + $0x340] sm:$0xff] }
  0x39   : > { %784 = vmatpush.msra.mxu2 %v281_v18  ;;  %807 = vmatpush.msra.mxu3 %v285_v19  ;;  %v316_v1 = vld [vmem:[%s1379_s15 + $0x360] sm:$0xff]  ;;  %v306_v2 = vld [vmem:[%s1379_s15 + $0x310] sm:$0xff]  ;;  %v331_v6 = vld [vmem:[%s1379_s15 + $0x3d8] sm:$0xff] }
  0x3a   : > { %1307 = vmatmul.msk.f32.vlgmr.msrb.gmra.mxu0 %vm352_vm0, %v184_v20  ;;  %1308 = vmatmul.msk.f32.vlgmr.msrb.gmra.mxu1 %vm352_vm0, %v185_v21  ;;  %v310_v3 = vld [vmem:[%s1379_s15 + $0x330] sm:$0xff]  ;;  %v335_v7 = vld [vmem:[%s1379_s15 + $0x3f8] sm:$0xff]  ;;  %v305_v8 = vld [vmem:[%s1379_s15 + $0x308] sm:$0xff] }
  0x3b   : > { %736 = vmatpush.msra.mxu0 %v275_v22  ;;  %759 = vmatpush.msra.mxu1 %v279_v23  ;;  %v198_v4 = vld [vmem:[%s1395_s19 + $0x34] sm:$0x3]  ;;  %v199_v5 = vld [vmem:[%s1395_s19 + $0x36] sm:$0x3]  ;;  %v309_v9 = vld [vmem:[%s1379_s15 + $0x328] sm:$0xff] }
  0x3c   : > { %785 = vmatpush.msra.mxu2 %v280_v24  ;;  %808 = vmatpush.msra.mxu3 %v284_v25  ;;  %v330_v10 = vld [vmem:[%s1379_s15 + $0x3d0] sm:$0xff]  ;;  %v304_v12 = vld [vmem:[%s1379_s15 + $0x300] sm:$0xff]  ;;  %v329_v14 = vld [vmem:[%s1379_s15 + $0x3c8] sm:$0xff] }
  0x3d   : > { %737 = vmatpush.msra.mxu0 %v274_v26  ;;  %760 = vmatpush.msra.mxu1 %v278_v27  ;;  %v334_v11 = vld [vmem:[%s1379_s15 + $0x3f0] sm:$0xff]  ;;  %v308_v13 = vld [vmem:[%s1379_s15 + $0x320] sm:$0xff]  ;;  %v333_v15 = vld [vmem:[%s1379_s15 + $0x3e8] sm:$0xff] }
  0x3e   : > { %1313 = vmatmul.msk.f32.vlgmr.msra.gmra.mxu2 %vm352_vm0, %v190_v28  ;;  %1314 = vmatmul.msk.f32.vlgmr.msra.gmra.mxu3 %vm352_vm0, %v191_v29  ;;  %v196_v16 = vld [vmem:[%s1395_s19 + $0x30] sm:$0x3]  ;;  %v197_v17 = vld [vmem:[%s1395_s19 + $0x32] sm:$0x3]  ;;  %v323_v18 = vld [vmem:[%s1379_s15 + $0x398] sm:$0xff] }
  0x3f   : > { %874 = vmatpush.msrb.mxu2 %v299_v30  ;;  %897 = vmatpush.msrb.mxu3 %v303_v31  ;;  %v327_v19 = vld [vmem:[%s1379_s15 + $0x3b8] sm:$0xff]  ;;  %v328_v20 = vld [vmem:[%s1379_s15 + $0x3c0] sm:$0xff]  ;;  %v322_v22 = vld [vmem:[%s1379_s15 + $0x390] sm:$0xff] }
  0x40   : > { %738 = vmatpush.msra.mxu0 %v273_v32  ;;  %761 = vmatpush.msra.mxu1 %v277_v33  ;;  %v332_v21 = vld [vmem:[%s1379_s15 + $0x3e0] sm:$0xff]  ;;  %v326_v23 = vld [vmem:[%s1379_s15 + $0x3b0] sm:$0xff]  ;;  %v202_v24 = vld [vmem:[%s1395_s19 + $0x3c] sm:$0x3] }
  0x41   : > { %875 = vmatpush.msrb.mxu2 %v298_v34  ;;  %898 = vmatpush.msrb.mxu3 %v302_v35  ;;  %v203_v25 = vld [vmem:[%s1395_s19 + $0x3e] sm:$0x3]  ;;  %v321_v28 = vld [vmem:[%s1379_s15 + $0x388] sm:$0xff]  ;;  %v346_v30 = vld [vmem:[%s1379_s15 + $0x450] sm:$0xff] }
  0x42   : > { %739 = vmatpush.msra.mxu0 %v272_v36  ;;  %762 = vmatpush.msra.mxu1 %v276_v37  ;;  %v347_v26 = vld [vmem:[%s1379_s15 + $0x458] sm:$0xff]  ;;  %v325_v29 = vld [vmem:[%s1379_s15 + $0x3a8] sm:$0xff]  ;;  %v350_v31 = vld [vmem:[%s1379_s15 + $0x470] sm:$0xff] }
  0x43   : > { %876 = vmatpush.msrb.mxu2 %v297_v38  ;;  %899 = vmatpush.msrb.mxu3 %v301_v39  ;;  %v351_v27 = vld [vmem:[%s1379_s15 + $0x478] sm:$0xff]  ;;  %v320_v32 = vld [vmem:[%s1379_s15 + $0x380] sm:$0xff]  ;;  %v345_v34 = vld [vmem:[%s1379_s15 + $0x448] sm:$0xff] }
  0x44   : > { %1311 = vmatmul.msk.f32.vlgmr.msra.gmra.mxu0 %vm352_vm0, %v188_v40  ;;  %1312 = vmatmul.msk.f32.vlgmr.msra.gmra.mxu1 %vm352_vm0, %v189_v41  ;;  %v324_v33 = vld [vmem:[%s1379_s15 + $0x3a0] sm:$0xff]  ;;  %v349_v35 = vld [vmem:[%s1379_s15 + $0x468] sm:$0xff]  ;;  %v200_v36 = vld [vmem:[%s1395_s19 + $0x38] sm:$0x3] }
  0x45   : > { %828 = vmatpush.msrb.mxu0 %v291_v42  ;;  %851 = vmatpush.msrb.mxu1 %v295_v43  ;;  %v201_v37 = vld [vmem:[%s1395_s19 + $0x3a] sm:$0x3]  ;;  %v344_v40 = vld [vmem:[%s1379_s15 + $0x440] sm:$0xff]  ;;  %v338_v42 = vld [vmem:[%s1379_s15 + $0x410] sm:$0xff] }
  0x46   : > { %877 = vmatpush.msrb.mxu2 %v296_v44  ;;  %900 = vmatpush.msrb.mxu3 %v300_v45  ;;  %v339_v38 = vld [vmem:[%s1379_s15 + $0x418] sm:$0xff]  ;;  %v348_v41 = vld [vmem:[%s1379_s15 + $0x460] sm:$0xff]  ;;  %v342_v43 = vld [vmem:[%s1379_s15 + $0x430] sm:$0xff] }
  0x47   : > { %829 = vmatpush.msrb.mxu0 %v290_v46  ;;  %852 = vmatpush.msrb.mxu1 %v294_v47  ;;  %v343_v39 = vld [vmem:[%s1379_s15 + $0x438] sm:$0xff]  ;;  %v206_v44 = vld [vmem:[%s1395_s19 + $0x44] sm:$0x3]  ;;  %v207_v45 = vld [vmem:[%s1395_s19 + $0x46] sm:$0x3] }
  0x48   : > { %1317 = vmatmul.msk.f32.vlgmr.msrb.gmra.mxu2 %vm352_vm0, %v194_v48  ;;  %1318 = vmatmul.msk.f32.vlgmr.msrb.gmra.mxu3 %vm352_vm0, %v195_v49  ;;  %v337_v46 = vld [vmem:[%s1379_s15 + $0x408] sm:$0xff]  ;;  %v336_v48 = vld [vmem:[%s1379_s15 + $0x400] sm:$0xff] }
  0x49   : > { %966 = vmatpush.msra.mxu2 %v315_v50  ;;  %989 = vmatpush.msra.mxu3 %v319_v51  ;;  %v341_v47 = vld [vmem:[%s1379_s15 + $0x428] sm:$0xff]  ;;  %v340_v49 = vld [vmem:[%s1379_s15 + $0x420] sm:$0xff] }
  0x4a   : > { %830 = vmatpush.msrb.mxu0 %v289_v52  ;;  %853 = vmatpush.msrb.mxu1 %v293_v53  ;;  %v204_v50 = vld [vmem:[%s1395_s19 + $0x40] sm:$0x3]  ;;  %v205_v51 = vld [vmem:[%s1395_s19 + $0x42] sm:$0x3] }
  0x4b   : > { %967 = vmatpush.msra.mxu2 %v314_v54  ;;  %990 = vmatpush.msra.mxu3 %v318_v55 }
  0x4c   : > { %831 = vmatpush.msrb.mxu0 %v288_v56  ;;  %854 = vmatpush.msrb.mxu1 %v292_v57 }
  0x4d   : > { %968 = vmatpush.msra.mxu2 %v313_v58  ;;  %991 = vmatpush.msra.mxu3 %v317_v59 }
  0x4e   : > { %1315 = vmatmul.msk.f32.vlgmr.msrb.gmra.mxu0 %vm352_vm0, %v192_v60  ;;  %1316 = vmatmul.msk.f32.vlgmr.msrb.gmra.mxu1 %vm352_vm0, %v193_v61 }
  0x4f   : > { %920 = vmatpush.msra.mxu0 %v307_v62  ;;  %943 = vmatpush.msra.mxu1 %v311_v63 }
  0x50   : > { %969 = vmatpush.msra.mxu2 %v312_v0  ;;  %992 = vmatpush.msra.mxu3 %v316_v1 }
  0x51   : > { %921 = vmatpush.msra.mxu0 %v306_v2  ;;  %944 = vmatpush.msra.mxu1 %v310_v3 }
  0x52   : > { %1321 = vmatmul.msk.f32.vlgmr.msra.gmra.mxu2 %vm352_vm0, %v198_v4  ;;  %1322 = vmatmul.msk.f32.vlgmr.msra.gmra.mxu3 %vm352_vm0, %v199_v5 }
  0x53   : > { %1058 = vmatpush.msrb.mxu2 %v331_v6  ;;  %1081 = vmatpush.msrb.mxu3 %v335_v7 }
  0x54   : > { %922 = vmatpush.msra.mxu0 %v305_v8  ;;  %945 = vmatpush.msra.mxu1 %v309_v9 }
  0x55   : > { %1059 = vmatpush.msrb.mxu2 %v330_v10  ;;  %1082 = vmatpush.msrb.mxu3 %v334_v11 }
  0x56   : > { %923 = vmatpush.msra.mxu0 %v304_v12  ;;  %946 = vmatpush.msra.mxu1 %v308_v13 }
  0x57   : > { %1060 = vmatpush.msrb.mxu2 %v329_v14  ;;  %1083 = vmatpush.msrb.mxu3 %v333_v15 }
  0x58   : > { %1319 = vmatmul.msk.f32.vlgmr.msra.gmra.mxu0 %vm352_vm0, %v196_v16  ;;  %1320 = vmatmul.msk.f32.vlgmr.msra.gmra.mxu1 %vm352_vm0, %v197_v17 }
  0x59   : > { %1012 = vmatpush.msrb.mxu0 %v323_v18  ;;  %1035 = vmatpush.msrb.mxu1 %v327_v19 }
  0x5a   : > { %1061 = vmatpush.msrb.mxu2 %v328_v20  ;;  %1084 = vmatpush.msrb.mxu3 %v332_v21 }
  0x5b   : > { %1013 = vmatpush.msrb.mxu0 %v322_v22  ;;  %1036 = vmatpush.msrb.mxu1 %v326_v23 }
  0x5c   : > { %1325 = vmatmul.msk.f32.vlgmr.msrb.gmra.mxu2 %vm352_vm0, %v202_v24  ;;  %1326 = vmatmul.msk.f32.vlgmr.msrb.gmra.mxu3 %vm352_vm0, %v203_v25 }
  0x5d   : > { %1150 = vmatpush.msra.mxu2 %v347_v26  ;;  %1173 = vmatpush.msra.mxu3 %v351_v27 }
  0x5e   : > { %1014 = vmatpush.msrb.mxu0 %v321_v28  ;;  %1037 = vmatpush.msrb.mxu1 %v325_v29 }
  0x5f   : > { %1151 = vmatpush.msra.mxu2 %v346_v30  ;;  %1174 = vmatpush.msra.mxu3 %v350_v31 }
  0x60   : > { %1015 = vmatpush.msrb.mxu0 %v320_v32  ;;  %1038 = vmatpush.msrb.mxu1 %v324_v33 }
  0x61   : > { %1152 = vmatpush.msra.mxu2 %v345_v34  ;;  %1175 = vmatpush.msra.mxu3 %v349_v35 }
  0x62   : > { %1323 = vmatmul.msk.f32.vlgmr.msrb.gmra.mxu0 %vm352_vm0, %v200_v36  ;;  %1324 = vmatmul.msk.f32.vlgmr.msrb.gmra.mxu1 %vm352_vm0, %v201_v37 }
  0x63   : > { %1104 = vmatpush.msra.mxu0 %v339_v38  ;;  %1127 = vmatpush.msra.mxu1 %v343_v39 }
  0x64   : > { %1153 = vmatpush.msra.mxu2 %v344_v40  ;;  %1176 = vmatpush.msra.mxu3 %v348_v41 }
  0x65   : > { %1105 = vmatpush.msra.mxu0 %v338_v42  ;;  %1128 = vmatpush.msra.mxu1 %v342_v43 }
  0x66   : > { %1329 = vmatmul.msk.f32.vlgmr.msra.gmra.mxu2 %vm352_vm0, %v206_v44  ;;  %1330 = vmatmul.msk.f32.vlgmr.msra.gmra.mxu3 %vm352_vm0, %v207_v45 }
  0x67   : > { %1106 = vmatpush.msra.mxu0 %v337_v46  ;;  %1129 = vmatpush.msra.mxu1 %v341_v47 }
  0x69   : > { %1107 = vmatpush.msra.mxu0 %v336_v48  ;;  %1130 = vmatpush.msra.mxu1 %v340_v49 }
  0x6a   : > { %1327 = vmatmul.msk.f32.vlgmr.msra.gmra.mxu0 %vm352_vm0, %v204_v50  ;;  %1328 = vmatmul.msk.f32.vlgmr.msra.gmra.mxu1 %vm352_vm0, %v205_v51 }
  0x98   : > { %v373_v52 = vpop.f32.mrf.mxu0 }
  0x99   : > { %v396_v53 = vpop.f32.mrf.mxu1  ;;  %1182 = vst.msk [vmem:[%s1610_s22] sm:$0x3] %vm1181_vm1, %v373_v52  ;;  %v419_v54 = vpop.f32.mrf.mxu2 }
  0x9a   : > { %v442_v55 = vpop.f32.mrf.mxu3  ;;  %1183 = vst.msk [vmem:[%s1610_s22 + $0x2] sm:$0x3] %vm1181_vm1, %v396_v53 }
  0x9b   : > { %1184 = vst.msk [vmem:[%s1610_s22 + $0x4] sm:$0x3] %vm1181_vm1, %v419_v54 }
  0x9c   : > { %1185 = vst.msk [vmem:[%s1610_s22 + $0x6] sm:$0x3] %vm1181_vm1, %v442_v55 }
  0xa3   : > { %v465_v56 = vpop.f32.mrf.mxu0  ;;  %v488_v57 = vpop.f32.mrf.mxu1 }
  0xa4   : > { %1186 = vst.msk [vmem:[%s1610_s22 + $0x8] sm:$0x3] %vm1181_vm1, %v465_v56  ;;  %v511_v58 = vpop.f32.mrf.mxu2  ;;  %v534_v59 = vpop.f32.mrf.mxu3 }
  0xa5   : > { %1187 = vst.msk [vmem:[%s1610_s22 + $0xa] sm:$0x3] %vm1181_vm1, %v488_v57 }
  0xa6   : > { %1188 = vst.msk [vmem:[%s1610_s22 + $0xc] sm:$0x3] %vm1181_vm1, %v511_v58 }
  0xa7   : > { %1189 = vst.msk [vmem:[%s1610_s22 + $0xe] sm:$0x3] %vm1181_vm1, %v534_v59 }
  0xad   : > { %v557_v60 = vpop.f32.mrf.mxu0  ;;  %v580_v61 = vpop.f32.mrf.mxu1 }
  0xae   : > { %1190 = vst.msk [vmem:[%s1610_s22 + $0x10] sm:$0x3] %vm1181_vm1, %v557_v60  ;;  %v603_v62 = vpop.f32.mrf.mxu2  ;;  %v626_v63 = vpop.f32.mrf.mxu3 }
  0xaf   : > { %1191 = vst.msk [vmem:[%s1610_s22 + $0x12] sm:$0x3] %vm1181_vm1, %v580_v61 }
  0xb0   : > { %1192 = vst.msk [vmem:[%s1610_s22 + $0x14] sm:$0x3] %vm1181_vm1, %v603_v62 }
  0xb1   : > { %1193 = vst.msk [vmem:[%s1610_s22 + $0x16] sm:$0x3] %vm1181_vm1, %v626_v63 }
  0xb7   : > { %v649_v0 = vpop.f32.mrf.mxu0  ;;  %v672_v1 = vpop.f32.mrf.mxu1 }
  0xb8   : > { %1194 = vst.msk [vmem:[%s1610_s22 + $0x18] sm:$0x3] %vm1181_vm1, %v649_v0  ;;  %v695_v2 = vpop.f32.mrf.mxu2  ;;  %v718_v3 = vpop.f32.mrf.mxu3 }
  0xb9   : > { %1195 = vst.msk [vmem:[%s1610_s22 + $0x1a] sm:$0x3] %vm1181_vm1, %v672_v1 }
  0xba   : > { %1196 = vst.msk [vmem:[%s1610_s22 + $0x1c] sm:$0x3] %vm1181_vm1, %v695_v2 }
  0xbb   : > { %1197 = vst.msk [vmem:[%s1610_s22 + $0x1e] sm:$0x3] %vm1181_vm1, %v718_v3 }
  0xc1   : > { %v741_v4 = vpop.f32.mrf.mxu0  ;;  %v764_v5 = vpop.f32.mrf.mxu1 }
  0xc2   : > { %1198 = vst.msk [vmem:[%s1610_s22 + $0x20] sm:$0x3] %vm1181_vm1, %v741_v4  ;;  %v787_v6 = vpop.f32.mrf.mxu2  ;;  %v810_v7 = vpop.f32.mrf.mxu3 }
  0xc3   : > { %1199 = vst.msk [vmem:[%s1610_s22 + $0x22] sm:$0x3] %vm1181_vm1, %v764_v5 }
  0xc4   : > { %1200 = vst.msk [vmem:[%s1610_s22 + $0x24] sm:$0x3] %vm1181_vm1, %v787_v6 }
  0xc5   : > { %1201 = vst.msk [vmem:[%s1610_s22 + $0x26] sm:$0x3] %vm1181_vm1, %v810_v7 }
  0xcb   : > { %v833_v8 = vpop.f32.mrf.mxu0  ;;  %v856_v9 = vpop.f32.mrf.mxu1 }
  0xcc   : > { %1202 = vst.msk [vmem:[%s1610_s22 + $0x28] sm:$0x3] %vm1181_vm1, %v833_v8  ;;  %v879_v10 = vpop.f32.mrf.mxu2  ;;  %v902_v11 = vpop.f32.mrf.mxu3 }
  0xcd   : > { %1203 = vst.msk [vmem:[%s1610_s22 + $0x2a] sm:$0x3] %vm1181_vm1, %v856_v9 }
  0xce   : > { %1204 = vst.msk [vmem:[%s1610_s22 + $0x2c] sm:$0x3] %vm1181_vm1, %v879_v10 }
  0xcf   : > { %1205 = vst.msk [vmem:[%s1610_s22 + $0x2e] sm:$0x3] %vm1181_vm1, %v902_v11 }
  0xd5   : > { %v925_v12 = vpop.f32.mrf.mxu0  ;;  %v948_v13 = vpop.f32.mrf.mxu1 }
  0xd6   : > { %1206 = vst.msk [vmem:[%s1610_s22 + $0x30] sm:$0x3] %vm1181_vm1, %v925_v12  ;;  %v971_v14 = vpop.f32.mrf.mxu2  ;;  %v994_v15 = vpop.f32.mrf.mxu3 }
  0xd7   : > { %1207 = vst.msk [vmem:[%s1610_s22 + $0x32] sm:$0x3] %vm1181_vm1, %v948_v13 }
  0xd8   : > { %1208 = vst.msk [vmem:[%s1610_s22 + $0x34] sm:$0x3] %vm1181_vm1, %v971_v14 }
  0xd9   : > { %1209 = vst.msk [vmem:[%s1610_s22 + $0x36] sm:$0x3] %vm1181_vm1, %v994_v15 }
  0xdf   : > { %v1017_v16 = vpop.f32.mrf.mxu0  ;;  %v1040_v17 = vpop.f32.mrf.mxu1 }
  0xe0   : > { %1210 = vst.msk [vmem:[%s1610_s22 + $0x38] sm:$0x3] %vm1181_vm1, %v1017_v16  ;;  %v1063_v18 = vpop.f32.mrf.mxu2  ;;  %v1086_v19 = vpop.f32.mrf.mxu3 }
  0xe1   : > { %1211 = vst.msk [vmem:[%s1610_s22 + $0x3a] sm:$0x3] %vm1181_vm1, %v1040_v17 }
  0xe2   : > { %1212 = vst.msk [vmem:[%s1610_s22 + $0x3c] sm:$0x3] %vm1181_vm1, %v1063_v18 }
  0xe3   : > { %1213 = vst.msk [vmem:[%s1610_s22 + $0x3e] sm:$0x3] %vm1181_vm1, %v1086_v19 }
  0xe7   : > { %v1109_v20 = vpop.f32.mrf.mxu0  ;;  %v1132_v21 = vpop.f32.mrf.mxu1 }
  0xe8   : > { %1214 = vst.msk [vmem:[%s1610_s22 + $0x40] sm:$0x3] %vm1181_vm1, %v1109_v20 }
  0xe9   : > { %1215 = vst.msk [vmem:[%s1610_s22 + $0x42] sm:$0x3] %vm1181_vm1, %v1132_v21  ;;  %v1155_v22 = vpop.f32.mrf.mxu2  ;;  %v1178_v23 = vpop.f32.mrf.mxu3 }
  0xea   : > { %1216 = vst.msk [vmem:[%s1610_s22 + $0x44] sm:$0x3] %vm1181_vm1, %v1155_v22 }
  0xeb   : > { %1217 = vst.msk [vmem:[%s1610_s22 + $0x46] sm:$0x3] %vm1181_vm1, %v1178_v23 }
  0xec PF: > { %s12_s9 = sadd.s32 1, %s1348_s9  }
  0xed   : > { %p9_p4 = scmp.ge.s32.totalorder %s12_s9, 4  }
  0xef   :  { %11 = sbr.rel (!%p9_p4) target bundleno = 1 (0x1), region = 61 }

// kernel: reverse.8
= control target key start
LH: loop header
LB: loop body
LE: loop exit
PB: predicated region body
PF: predicated region fallthrough
CT: control target
= control target key end

     0   :  { %s344_s0 = inlined_call_operand.vmem [shape: f32[16,2,16,7], index: 0, kind: input, shape index: {}]   ;;  %s345_s1 = inlined_call_operand.vmem [shape: f32[16,2,16,7], index: 1, kind: output, shape index: {}]  }
   0x1   :  { %v112_v0 = vld [vmem:[%s344_s0 + $0x60] sm:$0xff]  ;;  %v113_v1 = vld [vmem:[%s344_s0 + $0xd0] sm:$0xff]  ;;  %v138_v14 = vld [vmem:[%s344_s0 + $0x68] sm:$0xff] }
   0x2   :  { %v115_v2 = vld [vmem:[%s344_s0 + $0x50] sm:$0xff]  ;;  %4 = vst [vmem:[%s345_s1] sm:$0xff] %v112_v0  ;;  %v117_v3 = vld [vmem:[%s344_s0 + $0xc0] sm:$0xff]  ;;  %v140_v15 = vld [vmem:[%s344_s0 + $0xd8] sm:$0xff] }
   0x3   :  { %114 = vst [vmem:[%s345_s1 + $0x70] sm:$0xff] %v113_v1  ;;  %v119_v4 = vld [vmem:[%s344_s0 + $0x40] sm:$0xff]  ;;  %v121_v5 = vld [vmem:[%s344_s0 + $0xb0] sm:$0xff]  ;;  %v142_v16 = vld [vmem:[%s344_s0 + $0x58] sm:$0xff] }
   0x4   :  { %116 = vst [vmem:[%s345_s1 + $0x10] sm:$0xff] %v115_v2  ;;  %v123_v6 = vld [vmem:[%s344_s0 + $0x30] sm:$0xff]  ;;  %v125_v7 = vld [vmem:[%s344_s0 + $0xa0] sm:$0xff]  ;;  %v144_v17 = vld [vmem:[%s344_s0 + $0xc8] sm:$0xff] }
   0x5   :  { %118 = vst [vmem:[%s345_s1 + $0x80] sm:$0xff] %v117_v3  ;;  %v127_v8 = vld [vmem:[%s344_s0 + $0x20] sm:$0xff]  ;;  %v129_v9 = vld [vmem:[%s344_s0 + $0x90] sm:$0xff]  ;;  %v146_v18 = vld [vmem:[%s344_s0 + $0x48] sm:$0xff] }
   0x6   :  { %120 = vst [vmem:[%s345_s1 + $0x20] sm:$0xff] %v119_v4  ;;  %v131_v10 = vld [vmem:[%s344_s0 + $0x10] sm:$0xff]  ;;  %v133_v11 = vld [vmem:[%s344_s0 + $0x80] sm:$0xff]  ;;  %v148_v19 = vld [vmem:[%s344_s0 + $0xb8] sm:$0xff] }
   0x7   :  { %122 = vst [vmem:[%s345_s1 + $0x90] sm:$0xff] %v121_v5  ;;  %v49_v12 = vld [vmem:[%s344_s0] sm:$0xff]  ;;  %v136_v13 = vld [vmem:[%s344_s0 + $0x70] sm:$0xff]  ;;  %v150_v20 = vld [vmem:[%s344_s0 + $0x38] sm:$0xff] }
   0x8   :  { %124 = vst [vmem:[%s345_s1 + $0x30] sm:$0xff] %v123_v6  ;;  %v152_v21 = vld [vmem:[%s344_s0 + $0xa8] sm:$0xff]  ;;  %v156_v23 = vld [vmem:[%s344_s0 + $0x98] sm:$0xff] }
   0x9   :  { %126 = vst [vmem:[%s345_s1 + $0xa0] sm:$0xff] %v125_v7  ;;  %v154_v22 = vld [vmem:[%s344_s0 + $0x28] sm:$0xff]  ;;  %v158_v24 = vld [vmem:[%s344_s0 + $0x18] sm:$0xff] }
   0xa   :  { %128 = vst [vmem:[%s345_s1 + $0x40] sm:$0xff] %v127_v8  ;;  %v160_v25 = vld [vmem:[%s344_s0 + $0x88] sm:$0xff]  ;;  %v164_v27 = vld [vmem:[%s344_s0 + $0x78] sm:$0xff] }
   0xb   :  { %130 = vst [vmem:[%s345_s1 + $0xb0] sm:$0xff] %v129_v9  ;;  %v162_v26 = vld [vmem:[%s344_s0 + $0x8] sm:$0xff] }
   0xc   :  { %132 = vst [vmem:[%s345_s1 + $0x50] sm:$0xff] %v131_v10 }
   0xd   :  { %134 = vst [vmem:[%s345_s1 + $0xc0] sm:$0xff] %v133_v11 }
   0xe   :  { %135 = vst [vmem:[%s345_s1 + $0x60] sm:$0xff] %v49_v12 }
   0xf   :  { %137 = vst [vmem:[%s345_s1 + $0xd0] sm:$0xff] %v136_v13 }
  0x10   :  { %139 = vst [vmem:[%s345_s1 + $0x8] sm:$0xff] %v138_v14 }
  0x11   :  { %141 = vst [vmem:[%s345_s1 + $0x78] sm:$0xff] %v140_v15 }
  0x12   :  { %143 = vst [vmem:[%s345_s1 + $0x18] sm:$0xff] %v142_v16 }
  0x13   :  { %145 = vst [vmem:[%s345_s1 + $0x88] sm:$0xff] %v144_v17 }
  0x14   :  { %147 = vst [vmem:[%s345_s1 + $0x28] sm:$0xff] %v146_v18 }
  0x15   :  { %149 = vst [vmem:[%s345_s1 + $0x98] sm:$0xff] %v148_v19 }
  0x16   :  { %151 = vst [vmem:[%s345_s1 + $0x38] sm:$0xff] %v150_v20 }
  0x17   :  { %153 = vst [vmem:[%s345_s1 + $0xa8] sm:$0xff] %v152_v21 }
  0x18   :  { %155 = vst [vmem:[%s345_s1 + $0x48] sm:$0xff] %v154_v22 }
  0x19   :  { %157 = vst [vmem:[%s345_s1 + $0xb8] sm:$0xff] %v156_v23 }
  0x1a   :  { %159 = vst [vmem:[%s345_s1 + $0x58] sm:$0xff] %v158_v24 }
  0x1b   :  { %161 = vst [vmem:[%s345_s1 + $0xc8] sm:$0xff] %v160_v25 }
  0x1c   :  { %163 = vst [vmem:[%s345_s1 + $0x68] sm:$0xff] %v162_v26 }
  0x1d   :  { %165 = vst [vmem:[%s345_s1 + $0xd8] sm:$0xff] %v164_v27 }

// kernel: fno2d_forward.12
= control target key start
LH: loop header
LB: loop body
LE: loop exit
PB: predicated region body
PF: predicated region fallthrough
CT: control target
= control target key end

     0   :  { %s567_s15 = smov 0   ;;  %s569_s16 = smov 0   ;;  %s657_s0 = inlined_call_operand.vmem [shape: f32[16,512], index: 0, kind: input, shape index: {}]   ;;  %s658_s1 = inlined_call_operand.vmem [shape: f32[16,16], index: 1, kind: input, shape index: {}]   ;;  %s659_s2 = inlined_call_operand.vmem [shape: f32[16,1], index: 2, kind: input, shape index: {}]   ;;  %s660_s3 = inlined_call_operand.vmem [shape: f32[16,512], index: 3, kind: input, shape index: {}]   ;;  %s661_s4 = inlined_call_operand.vmem [shape: f32[16,512], index: 4, kind: output, shape index: {}]  }
   0x1   :  { %s571_s17 = smov 0  }
   0x2 LB: > { %s461_s18 = sadd.s32 4294967295, %s539_s17   ;;  %s584_s19 = sadd.s32 1, %s539_s17   ;;  %s539_s17 = sphi %s571_s17, %s666_s17   ;;  %s535_s16 = sphi %s569_s16, %s665_s16   ;;  %s531_s15 = sphi %s567_s15, %s664_s15  }
   0x3   : > { %s18_s20 = ssub.s32 %s539_s17, %s584_s19  ;;  %s21_s21 = sadd.s32 1, %s535_s16 }
   0x4   : > { %p19_p0 = scmp.eq.s32.totalorder %s18_s20, 0  ;;  %p28_p1 = scmp.ne.s32.totalorder %s535_s16, %s531_s15 }
   0x5   : > { %p29_p2 = scmp.eq.s32.totalorder %s539_s17, 0  ;;  %p126_p3 = scmp.eq.s32.totalorder %s461_s18, 1 }
   0x6   : > { %s595_s22 = scalar_select %p19_p0, %s535_s16, %s21_s21  }
   0x7   : > { %p597_p4 = por %p29_p2, %p28_p1  ;;  %p601_p5 = por %p126_p3, %p28_p1 }
   0x8   : > { %p464_p6 = scmp.ge.s32.totalorder %s539_s17, 2 }
   0xa   : > { %154 = sbr.rel (%p464_p6) target bundleno = 31 (0x1f), region = 24 }
   0xf   : > { %157 = sbr.rel (!%p597_p4) target bundleno = 23 (0x17), region = 28  ;;  %s159_s25 = sand.u32 (%p597_p4), 1, %s535_s16  }
  0x10   : > { %s484_s26 = sshll.u32 (%p597_p4), %s539_s17, 4  ;;  %s465_s27 = sshll.u32 (%p597_p4), %s159_s25, 5 }
  0x11   : > { %s164_s30 = scalar_lea.vmem (%p597_p4), %s657_s0, %s484_s26  ;;  %s161_s5 = scalar_lea.vmem (%p597_p4), [#allocation2], %s465_s27 }
  0x12   : > { %v177_v0 = vld [vmem:[%s164_s30] sm:$0xff] (%p597_p4)  ;;  %v179_v1 = vld [vmem:[%s164_s30 + $0x8] sm:$0xff] (%p597_p4) }
  0x13   : > { %v181_v2 = vld [vmem:[%s164_s30 + $0x20] sm:$0xff] (%p597_p4)  ;;  %178 = vst [vmem:[%s161_s5] sm:$0xff] (%p597_p4), %v177_v0  ;;  %v183_v3 = vld [vmem:[%s164_s30 + $0x28] sm:$0xff] (%p597_p4) }
  0x14   : > { %180 = vst [vmem:[%s161_s5 + $0x8] sm:$0xff] %v179_v1 }
  0x15   : > { %182 = vst [vmem:[%s161_s5 + $0x10] sm:$0xff] %v181_v2 }
  0x16   : > { %184 = vst [vmem:[%s161_s5 + $0x18] sm:$0xff] %v183_v3 }
  0x17 PF: > { %190 = sbr.rel (!%p597_p4) target bundleno = 31 (0x1f), region = 51  ;;  %s192_s6 = sand.u32 (%p597_p4), 1, %s535_s16  }
  0x18   : > { %s485_s7 = sshll.u32 (%p597_p4), %s539_s17, 4  ;;  %s468_s8 = sshll.u32 (%p597_p4), %s192_s6, 5 }
  0x19   : > { %s197_s11 = scalar_lea.vmem (%p597_p4), %s660_s3, %s485_s7  ;;  %s194_s12 = scalar_lea.vmem (%p597_p4), [#allocation3], %s468_s8 }
  0x1a   : > { %v210_v4 = vld [vmem:[%s197_s11] sm:$0xff] (%p597_p4)  ;;  %v212_v5 = vld [vmem:[%s197_s11 + $0x8] sm:$0xff] (%p597_p4) }
  0x1b   : > { %v214_v6 = vld [vmem:[%s197_s11 + $0x20] sm:$0xff] (%p597_p4)  ;;  %211 = vst [vmem:[%s194_s12] sm:$0xff] (%p597_p4), %v210_v4  ;;  %v216_v7 = vld [vmem:[%s197_s11 + $0x28] sm:$0xff] (%p597_p4) }
  0x1c   : > { %213 = vst [vmem:[%s194_s12 + $0x8] sm:$0xff] %v212_v5 }
  0x1d   : > { %215 = vst [vmem:[%s194_s12 + $0x10] sm:$0xff] %v214_v6 }
  0x1e   : > { %217 = vst [vmem:[%s194_s12 + $0x18] sm:$0xff] %v216_v7 }
  0x1f PF: > { %p471_p7 = scmp.ge.s32.totalorder %s539_s17, 1  ;;  %p222_p8 = scmp.lt.s32.totalorder %s539_s17, 3 }
  0x21   : > { %p223_p9 = pnand %p471_p7, %p222_p8 }
  0x22   : > { %s229_s13 = sand.u32 (!%p223_p9), 1, %s531_s15  }
  0x23   : > { %226 = sbr.rel (%p223_p9) target bundleno = 194 (0xc2), region = 74  ;;  %s626_s21 = sshll.u32 (!%p223_p9), %s229_s13, 5 }
  0x24   : > { %s231_s23 = scalar_lea.vmem (!%p223_p9), [#allocation2], %s626_s21  ;;  %s238_s30 = scalar_lea.vmem (!%p223_p9), [#allocation3], %s626_s21 }
  0x25   : > { %s263_s5 = scalar_lea.vmem (!%p223_p9), [#allocation4], %s626_s21 }
  0x28   : > { %v273_v8 = vld [vmem:[%s659_s2] sm:$0xff]  ;;  %v541_v9 = vmov 0   ;;  %v269_v10 = vld [vmem:[%s231_s23 + $0x10] sm:$0xff]  ;;  %v270_v11 = vld [vmem:[%s231_s23 + $0x18] sm:$0xff]  ;;  %vm289_vm0 = vcmask 130048   ;;  %s486_s6 = sshll.u32 (%p601_p5), %s461_s18, 4 }
  0x29   : > { %516 = vset.pattern.permute.xlu0 %v541_v9  ;;  %v267_v12 = vld [vmem:[%s231_s23] sm:$0xff]  ;;  %310 = vmatpush.msra.mxu0 %v269_v10  ;;  %v268_v13 = vld [vmem:[%s231_s23 + $0x8] sm:$0xff]  ;;  %v277_v29 = vld [vmem:[%s238_s30 + $0x10] sm:$0xff]  ;;  %s363_s9 = scalar_lea.vmem (%p601_p5), %s661_s4, %s486_s6 }
  0x2a   : > { %281 = vperm.xlu0 %516, %v273_v8   ;;  %487 = vmatpush.msra.mxu2 %v269_v10  ;;  %v271_v14 = vld [vmem:[%s658_s1] sm:$0xff]  ;;  %v272_v15 = vld [vmem:[%s658_s1 + $0x8] sm:$0xff]  ;;  %v278_v32 = vld [vmem:[%s238_s30 + $0x18] sm:$0xff] }
  0x2b   : > { %333 = vmatpush.msra.mxu1 %v270_v11  ;;  %489 = vmatpush.msra.mxu3 %v270_v11  ;;  %v274_v16 = vld [vmem:[%s659_s2 + $0x8] sm:$0xff]  ;;  %v275_v18 = vld [vmem:[%s238_s30] sm:$0xff] }
  0x2c   : > { %311 = vmatpush.msra.mxu0 %v267_v12  ;;  %488 = vmatpush.msra.mxu2 %v267_v12  ;;  %v276_v21 = vld [vmem:[%s238_s30 + $0x8] sm:$0xff] }
  0x2d   : > { %334 = vmatpush.msra.mxu1 %v268_v13  ;;  %490 = vmatpush.msra.mxu3 %v268_v13 }
  0x2e   : > { %475 = vmatmul.msk.f32.vlgmr.msra.gmra.mxu0 %vm289_vm0, %v271_v14  ;;  %476 = vmatmul.msk.f32.vlgmr.msra.gmra.mxu2 %vm289_vm0, %v272_v15 }
  0x2f   : > { %477 = vmatmul.msk.f32.vlgmr.msra.gmra.mxu1 %vm289_vm0, %v271_v14  ;;  %478 = vmatmul.msk.f32.vlgmr.msra.gmra.mxu3 %vm289_vm0, %v272_v15 }
  0x32   : > { %286 = vperm.xlu0 %516, %v274_v16  }
  0x9c   : > { %v282_v17 = vpop.permute.xlu0 %281 }
  0xa4   : > { %v287_v27 = vpop.permute.xlu0 %286 }
  0xab   : > { %v313_v19 = vpop.f32.mrf.mxu0 }
  0xac   : > { %v314_v20 = vadd.f32 %v313_v19, %v282_v17  ;;  %v336_v22 = vpop.f32.mrf.mxu1 }
  0xad   : > { %v337_v23 = vadd.f32 %v336_v22, %v282_v17 }
  0xae   : > { %v342_v24 = vadd.f32 %v314_v20, %v275_v18 }
  0xaf   : > { %v343_v25 = vadd.f32 %v337_v23, %v276_v21 }
  0xb0   : > { %v346_v26 = vmax.f32 %v342_v24, 0.0 }
  0xb1   : > { %v347_v28 = vmax.f32 %v343_v25, 0.0  ;;  %v316_v30 = vpop.f32.mrf.mxu2 }
  0xb2   : > { %350 = vst [vmem:[%s263_s5] sm:$0xff] %v346_v26  ;;  %v317_v31 = vadd.f32 %v316_v30, %v287_v27  ;;  %v339_v33 = vpop.f32.mrf.mxu3 }
  0xb3   : > { %351 = vst [vmem:[%s263_s5 + $0x8] sm:$0xff] %v347_v28  ;;  %v340_v34 = vadd.f32 %v339_v33, %v287_v27 }
  0xb4   : > { %v344_v35 = vadd.f32 %v317_v31, %v277_v29 }
  0xb5   : > { %v345_v36 = vadd.f32 %v340_v34, %v278_v32  ;;  %360 = sbr.rel (!%p601_p5) target bundleno = 194 (0xc2), region = 86 }
  0xb6   : > { %v348_v37 = vmax.f32 %v344_v35, 0.0 }
  0xb7   : > { %v349_v38 = vmax.f32 %v345_v36, 0.0 }
  0xb8   : > { %352 = vst [vmem:[%s263_s5 + $0x10] sm:$0xff] %v348_v37 }
  0xb9   : > { %353 = vst [vmem:[%s263_s5 + $0x18] sm:$0xff] %v349_v38  ;;  %v376_v39 = vld [vmem:[%s263_s5] sm:$0xff] (%p601_p5) }
  0xba   : > { %v378_v40 = vld [vmem:[%s263_s5 + $0x8] sm:$0xff]  ;;  %377 = vst [vmem:[%s363_s9] sm:$0xff] %v376_v39 }
  0xbb   : > { %379 = vst [vmem:[%s363_s9 + $0x8] sm:$0xff] %v378_v40 }
  0xbf   : > { %v380_v41 = vld [vmem:[%s263_s5 + $0x10] sm:$0xff] }
  0xc0   : > { %v382_v42 = vld [vmem:[%s263_s5 + $0x18] sm:$0xff]  ;;  %381 = vst [vmem:[%s363_s9 + $0x20] sm:$0xff] %v380_v41 }
  0xc1   : > { %383 = vst [vmem:[%s363_s9 + $0x28] sm:$0xff] %v382_v42 }
  0xc2 PF: > { %p11_p10 = scmp.ge.s32.totalorder %s584_s19, 4   ;;  %s664_s15 = smov %s535_s16 }
  0xc3   : > { %s665_s16 = smov %s595_s22  ;;  %s666_s17 = smov %s584_s19 }
  0xc4   :  { %13 = sbr.rel (!%p11_p10) target bundleno = 2 (0x2), region = 148 }

// kernel: fno2d_forward.18
= control target key start
LH: loop header
LB: loop body
LE: loop exit
PB: predicated region body
PF: predicated region fallthrough
CT: control target
= control target key end

     0   :  { %s563_s15 = smov 0   ;;  %s565_s16 = smov 0   ;;  %s653_s0 = inlined_call_operand.vmem [shape: f32[16,512], index: 0, kind: input, shape index: {}]   ;;  %s654_s1 = inlined_call_operand.vmem [shape: f32[16,16], index: 1, kind: input, shape index: {}]   ;;  %s655_s2 = inlined_call_operand.vmem [shape: f32[16,1], index: 2, kind: input, shape index: {}]   ;;  %s656_s3 = inlined_call_operand.vmem [shape: f32[16,512], index: 3, kind: input, shape index: {}]   ;;  %s657_s4 = inlined_call_operand.vmem [shape: f32[16,512], index: 4, kind: output, shape index: {}]  }
   0x1   :  { %s567_s17 = smov 0  }
   0x2 LB: > { %s457_s18 = sadd.s32 4294967295, %s535_s17   ;;  %s580_s19 = sadd.s32 1, %s535_s17   ;;  %s535_s17 = sphi %s567_s17, %s662_s17   ;;  %s531_s16 = sphi %s565_s16, %s661_s16   ;;  %s527_s15 = sphi %s563_s15, %s660_s15  }
   0x3   : > { %s18_s20 = ssub.s32 %s535_s17, %s580_s19  ;;  %s21_s21 = sadd.s32 1, %s531_s16 }
   0x4   : > { %p19_p0 = scmp.eq.s32.totalorder %s18_s20, 0  ;;  %p28_p1 = scmp.ne.s32.totalorder %s531_s16, %s527_s15 }
   0x5   : > { %p29_p2 = scmp.eq.s32.totalorder %s535_s17, 0  ;;  %p126_p3 = scmp.eq.s32.totalorder %s457_s18, 1 }
   0x6   : > { %s591_s22 = scalar_select %p19_p0, %s531_s16, %s21_s21  }
   0x7   : > { %p593_p4 = por %p29_p2, %p28_p1  ;;  %p597_p5 = por %p126_p3, %p28_p1 }
   0x8   : > { %p460_p6 = scmp.ge.s32.totalorder %s535_s17, 2 }
   0xa   : > { %154 = sbr.rel (%p460_p6) target bundleno = 31 (0x1f), region = 24 }
   0xf   : > { %157 = sbr.rel (!%p593_p4) target bundleno = 23 (0x17), region = 28  ;;  %s159_s25 = sand.u32 (%p593_p4), 1, %s531_s16  }
  0x10   : > { %s480_s26 = sshll.u32 (%p593_p4), %s535_s17, 4  ;;  %s461_s27 = sshll.u32 (%p593_p4), %s159_s25, 5 }
  0x11   : > { %s164_s30 = scalar_lea.vmem (%p593_p4), %s653_s0, %s480_s26  ;;  %s161_s5 = scalar_lea.vmem (%p593_p4), [#allocation2], %s461_s27 }
  0x12   : > { %v177_v0 = vld [vmem:[%s164_s30] sm:$0xff] (%p593_p4)  ;;  %v179_v1 = vld [vmem:[%s164_s30 + $0x8] sm:$0xff] (%p593_p4) }
  0x13   : > { %v181_v2 = vld [vmem:[%s164_s30 + $0x20] sm:$0xff] (%p593_p4)  ;;  %178 = vst [vmem:[%s161_s5] sm:$0xff] (%p593_p4), %v177_v0  ;;  %v183_v3 = vld [vmem:[%s164_s30 + $0x28] sm:$0xff] (%p593_p4) }
  0x14   : > { %180 = vst [vmem:[%s161_s5 + $0x8] sm:$0xff] %v179_v1 }
  0x15   : > { %182 = vst [vmem:[%s161_s5 + $0x10] sm:$0xff] %v181_v2 }
  0x16   : > { %184 = vst [vmem:[%s161_s5 + $0x18] sm:$0xff] %v183_v3 }
  0x17 PF: > { %190 = sbr.rel (!%p593_p4) target bundleno = 31 (0x1f), region = 51  ;;  %s192_s6 = sand.u32 (%p593_p4), 1, %s531_s16  }
  0x18   : > { %s481_s7 = sshll.u32 (%p593_p4), %s535_s17, 4  ;;  %s464_s8 = sshll.u32 (%p593_p4), %s192_s6, 5 }
  0x19   : > { %s197_s11 = scalar_lea.vmem (%p593_p4), %s656_s3, %s481_s7  ;;  %s194_s12 = scalar_lea.vmem (%p593_p4), [#allocation3], %s464_s8 }
  0x1a   : > { %v210_v4 = vld [vmem:[%s197_s11] sm:$0xff] (%p593_p4)  ;;  %v212_v5 = vld [vmem:[%s197_s11 + $0x8] sm:$0xff] (%p593_p4) }
  0x1b   : > { %v214_v6 = vld [vmem:[%s197_s11 + $0x20] sm:$0xff] (%p593_p4)  ;;  %211 = vst [vmem:[%s194_s12] sm:$0xff] (%p593_p4), %v210_v4  ;;  %v216_v7 = vld [vmem:[%s197_s11 + $0x28] sm:$0xff] (%p593_p4) }
  0x1c   : > { %213 = vst [vmem:[%s194_s12 + $0x8] sm:$0xff] %v212_v5 }
  0x1d   : > { %215 = vst [vmem:[%s194_s12 + $0x10] sm:$0xff] %v214_v6 }
  0x1e   : > { %217 = vst [vmem:[%s194_s12 + $0x18] sm:$0xff] %v216_v7 }
  0x1f PF: > { %p467_p7 = scmp.ge.s32.totalorder %s535_s17, 1  ;;  %p222_p8 = scmp.lt.s32.totalorder %s535_s17, 3 }
  0x21   : > { %p223_p9 = pnand %p467_p7, %p222_p8 }
  0x22   : > { %s229_s13 = sand.u32 (!%p223_p9), 1, %s527_s15  }
  0x23   : > { %226 = sbr.rel (%p223_p9) target bundleno = 192 (0xc0), region = 74  ;;  %s622_s21 = sshll.u32 (!%p223_p9), %s229_s13, 5 }
  0x24   : > { %s231_s23 = scalar_lea.vmem (!%p223_p9), [#allocation2], %s622_s21  ;;  %s238_s30 = scalar_lea.vmem (!%p223_p9), [#allocation3], %s622_s21 }
  0x25   : > { %s263_s5 = scalar_lea.vmem (!%p223_p9), [#allocation4], %s622_s21 }
  0x28   : > { %v273_v8 = vld [vmem:[%s655_s2] sm:$0xff]  ;;  %v537_v9 = vmov 0   ;;  %v269_v10 = vld [vmem:[%s231_s23 + $0x10] sm:$0xff]  ;;  %v270_v11 = vld [vmem:[%s231_s23 + $0x18] sm:$0xff]  ;;  %vm289_vm0 = vcmask 130048   ;;  %s482_s6 = sshll.u32 (%p597_p5), %s457_s18, 4 }
  0x29   : > { %512 = vset.pattern.permute.xlu0 %v537_v9  ;;  %v267_v12 = vld [vmem:[%s231_s23] sm:$0xff]  ;;  %310 = vmatpush.msra.mxu0 %v269_v10  ;;  %v268_v13 = vld [vmem:[%s231_s23 + $0x8] sm:$0xff]  ;;  %v277_v27 = vld [vmem:[%s238_s30 + $0x10] sm:$0xff]  ;;  %s359_s9 = scalar_lea.vmem (%p597_p5), %s657_s4, %s482_s6 }
  0x2a   : > { %281 = vperm.xlu0 %512, %v273_v8   ;;  %483 = vmatpush.msra.mxu2 %v269_v10  ;;  %v271_v14 = vld [vmem:[%s654_s1] sm:$0xff]  ;;  %v272_v15 = vld [vmem:[%s654_s1 + $0x8] sm:$0xff]  ;;  %v278_v30 = vld [vmem:[%s238_s30 + $0x18] sm:$0xff] }
  0x2b   : > { %333 = vmatpush.msra.mxu1 %v270_v11  ;;  %485 = vmatpush.msra.mxu3 %v270_v11  ;;  %v274_v16 = vld [vmem:[%s655_s2 + $0x8] sm:$0xff]  ;;  %v275_v18 = vld [vmem:[%s238_s30] sm:$0xff] }
  0x2c   : > { %311 = vmatpush.msra.mxu0 %v267_v12  ;;  %484 = vmatpush.msra.mxu2 %v267_v12  ;;  %v276_v21 = vld [vmem:[%s238_s30 + $0x8] sm:$0xff] }
  0x2d   : > { %334 = vmatpush.msra.mxu1 %v268_v13  ;;  %486 = vmatpush.msra.mxu3 %v268_v13 }
  0x2e   : > { %471 = vmatmul.msk.f32.vlgmr.msra.gmra.mxu0 %vm289_vm0, %v271_v14  ;;  %472 = vmatmul.msk.f32.vlgmr.msra.gmra.mxu2 %vm289_vm0, %v272_v15 }
  0x2f   : > { %473 = vmatmul.msk.f32.vlgmr.msra.gmra.mxu1 %vm289_vm0, %v271_v14  ;;  %474 = vmatmul.msk.f32.vlgmr.msra.gmra.mxu3 %vm289_vm0, %v272_v15 }
  0x32   : > { %286 = vperm.xlu0 %512, %v274_v16  }
  0x9c   : > { %v282_v17 = vpop.permute.xlu0 %281 }
  0xa4   : > { %v287_v26 = vpop.permute.xlu0 %286 }
  0xab   : > { %v313_v19 = vpop.f32.mrf.mxu0 }
  0xac   : > { %v314_v20 = vadd.f32 %v313_v19, %v282_v17  ;;  %v336_v22 = vpop.f32.mrf.mxu1 }
  0xad   : > { %v337_v23 = vadd.f32 %v336_v22, %v282_v17 }
  0xae   : > { %v342_v24 = vadd.f32 %v314_v20, %v275_v18 }
  0xaf   : > { %v343_v25 = vadd.f32 %v337_v23, %v276_v21 }
  0xb0   : > { %346 = vst [vmem:[%s263_s5] sm:$0xff] %v342_v24 }
  0xb1   : > { %347 = vst [vmem:[%s263_s5 + $0x8] sm:$0xff] %v343_v25  ;;  %v316_v28 = vpop.f32.mrf.mxu2 }
  0xb2   : > { %v317_v29 = vadd.f32 %v316_v28, %v287_v26  ;;  %v339_v31 = vpop.f32.mrf.mxu3 }
  0xb3   : > { %v340_v32 = vadd.f32 %v339_v31, %v287_v26  ;;  %356 = sbr.rel (!%p597_p5) target bundleno = 192 (0xc0), region = 86 }
  0xb4   : > { %v344_v33 = vadd.f32 %v317_v29, %v277_v27 }
  0xb5   : > { %v345_v34 = vadd.f32 %v340_v32, %v278_v30 }
  0xb6   : > { %348 = vst [vmem:[%s263_s5 + $0x10] sm:$0xff] %v344_v33 }
  0xb7   : > { %349 = vst [vmem:[%s263_s5 + $0x18] sm:$0xff] %v345_v34  ;;  %v372_v35 = vld [vmem:[%s263_s5] sm:$0xff] (%p597_p5) }
  0xb8   : > { %v374_v36 = vld [vmem:[%s263_s5 + $0x8] sm:$0xff]  ;;  %373 = vst [vmem:[%s359_s9] sm:$0xff] %v372_v35 }
  0xb9   : > { %375 = vst [vmem:[%s359_s9 + $0x8] sm:$0xff] %v374_v36 }
  0xbd   : > { %v376_v37 = vld [vmem:[%s263_s5 + $0x10] sm:$0xff] }
  0xbe   : > { %v378_v38 = vld [vmem:[%s263_s5 + $0x18] sm:$0xff]  ;;  %377 = vst [vmem:[%s359_s9 + $0x20] sm:$0xff] %v376_v37 }
  0xbf   : > { %379 = vst [vmem:[%s359_s9 + $0x28] sm:$0xff] %v378_v38 }
  0xc0 PF: > { %p11_p10 = scmp.ge.s32.totalorder %s580_s19, 4   ;;  %s660_s15 = smov %s531_s16 }
  0xc1   : > { %s661_s16 = smov %s591_s22  ;;  %s662_s17 = smov %s580_s19 }
  0xc2   :  { %13 = sbr.rel (!%p11_p10) target bundleno = 2 (0x2), region = 148 }

// kernel: fno2d_forward.19
= control target key start
LH: loop header
LB: loop body
LE: loop exit
PB: predicated region body
PF: predicated region fallthrough
CT: control target
= control target key end

     0   :  { %s1273_s0 = inlined_call_operand.vmem [shape: f32[16,512], index: 0, kind: input, shape index: {}]   ;;  %s1274_s1 = inlined_call_operand.vmem [shape: f32[128,16], index: 1, kind: input, shape index: {}]   ;;  %s1275_s2 = inlined_call_operand.vmem [shape: f32[128,1], index: 2, kind: input, shape index: {}]   ;;  %s1276_s3 = inlined_call_operand.vmem [shape: f32[128,1], index: 3, kind: input, shape index: {}]   ;;  %s1277_s4 = inlined_call_operand.<no memory space> [shape: f32[1,1], index: 4, kind: input, shape index: {}]   ;;  %s1278_s5 = inlined_call_operand.vmem [shape: f32[1,512], index: 5, kind: output, shape index: {}]  }
   0x1   :  { %v10_v0 = vstv %s1277_s4 }
   0x2   :  { %11 = vst [vmem:[#allocation2] sm:$0x1] %v10_v0 }
   0x3   :  { %s961_s20 = smov 0   ;;  %s963_s21 = smov 0  }
   0x4   :  { %s965_s22 = smov 0  }
   0x5 LB: > { %s826_s4 = sadd.s32 4294967295, %s925_s22   ;;  %s978_s23 = sadd.s32 1, %s925_s22   ;;  %s925_s22 = sphi %s965_s22, %s1281_s22   ;;  %s921_s21 = sphi %s963_s21, %s1280_s21   ;;  %s917_s20 = sphi %s961_s20, %s1279_s20  }
   0x6   : > { %s21_s24 = ssub.s32 %s925_s22, %s978_s23  ;;  %s24_s25 = sadd.s32 1, %s921_s21 }
   0x7   : > { %p22_p0 = scmp.eq.s32.totalorder %s21_s24, 0  ;;  %p31_p1 = scmp.ne.s32.totalorder %s921_s21, %s917_s20 }
   0x8   : > { %p32_p2 = scmp.eq.s32.totalorder %s925_s22, 0  ;;  %p829_p4 = scmp.ge.s32.totalorder %s925_s22, 2 }
   0x9   : > { %s987_s26 = scalar_select %p22_p0, %s921_s21, %s24_s25  }
   0xa   : > { %p33_p3 = por %p32_p2, %p31_p1  ;;  %179 = sbr.rel (%p829_p4) target bundleno = 23 (0x17), region = 32 }
   0xf   : > { %182 = sbr.rel (!%p33_p3) target bundleno = 23 (0x17), region = 36  ;;  %s184_s27 = sand.u32 (%p33_p3), 1, %s921_s21  }
  0x10   : > { %s870_s28 = sshll.u32 (%p33_p3), %s925_s22, 4  ;;  %s830_s29 = sshll.u32 (%p33_p3), %s184_s27, 5 }
  0x11   : > { %s189_s7 = scalar_lea.vmem (%p33_p3), %s1273_s0, %s870_s28  ;;  %s186_s8 = scalar_lea.vmem (%p33_p3), [#allocation3], %s830_s29 }
  0x12   : > { %v202_v1 = vld [vmem:[%s189_s7] sm:$0xff] (%p33_p3)  ;;  %v204_v2 = vld [vmem:[%s189_s7 + $0x8] sm:$0xff] (%p33_p3) }
  0x13   : > { %v206_v3 = vld [vmem:[%s189_s7 + $0x20] sm:$0xff] (%p33_p3)  ;;  %203 = vst [vmem:[%s186_s8] sm:$0xff] (%p33_p3), %v202_v1  ;;  %v208_v4 = vld [vmem:[%s189_s7 + $0x28] sm:$0xff] (%p33_p3) }
  0x14   : > { %205 = vst [vmem:[%s186_s8 + $0x8] sm:$0xff] %v204_v2 }
  0x15   : > { %207 = vst [vmem:[%s186_s8 + $0x10] sm:$0xff] %v206_v3 }
  0x16   : > { %209 = vst [vmem:[%s186_s8 + $0x18] sm:$0xff] %v208_v4 }
  0x17 PF: > { %p833_p5 = scmp.ge.s32.totalorder %s925_s22, 1  ;;  %p214_p6 = scmp.lt.s32.totalorder %s925_s22, 3 }
  0x19   : > { %p215_p7 = pnand %p833_p5, %p214_p6 }
  0x1a   : > { %s221_s15 = sand.u32 (!%p215_p7), 1, %s917_s20   ;;  %s835_s28 = sshll.u32 (!%p215_p7), %s826_s4, 1 }
  0x1b   : > { %218 = sbr.rel (%p215_p7) target bundleno = 265 (0x109), region = 59  ;;  %s834_s16 = sshll.u32 (!%p215_p7), %s221_s15, 5 }
  0x1c   : > { %s223_s17 = scalar_lea.vmem (!%p215_p7), [#allocation3], %s834_s16  ;;  %p249_p8 = scmp.lt.s32.totalorder (!%p215_p7), %s835_s28, 3 }
  0x20   : > { %v277_v5 = vld [vmem:[%s1275_s2 + $0x20] sm:$0xff]  ;;  %v275_v6 = vld [vmem:[%s1275_s2 + $0x10] sm:$0xff]  ;;  %v927_v8 = vmov 0   ;;  %vm369_vm0 = vcmask 130048   ;;  %v278_v15 = vld [vmem:[%s1275_s2 + $0x28] sm:$0xff]  ;;  %s1283_s28 = smov (!%p249_p8, %s835_s28), 3 }
  0x21   : > { %v273_v7 = vld [vmem:[%s1275_s2] sm:$0xff]  ;;  %902 = vset.pattern.permute.xlu2 %v927_v8  ;;  %901 = vset.pattern.permute.xlu1 %v927_v8  ;;  %v271_v9 = vld [vmem:[%s223_s17 + $0x10] sm:$0xff]  ;;  %v270_v12 = vld [vmem:[%s223_s17 + $0x8] sm:$0xff]  ;;  %vm762_vm1 = vcmask 1040384   ;;  %s251_s22 = scalar_lea.vmem %s1278_s5, %s1283_s28 }
  0x22   : > { %900 = vset.pattern.permute.xlu0 %v927_v8  ;;  %311 = vperm.xlu2 %902, %v277_v5   ;;  %v272_v10 = vld [vmem:[%s223_s17 + $0x18] sm:$0xff]  ;;  %v269_v11 = vld [vmem:[%s223_s17] sm:$0xff]  ;;  %v279_v22 = vld [vmem:[%s1275_s2 + $0x30] sm:$0xff] }
  0x23   : > { %301 = vperm.xlu1 %901, %v275_v6   ;;  %291 = vperm.xlu0 %900, %v273_v7   ;;  %v253_v13 = vld [vmem:[%s1274_s1] sm:$0xff]  ;;  %v276_v16 = vld [vmem:[%s1275_s2 + $0x18] sm:$0xff]  ;;  %v274_v17 = vld [vmem:[%s1275_s2 + $0x8] sm:$0xff] }
  0x24   : > { %432 = vmatpush.msra.mxu0 %v271_v9  ;;  %871 = vmatpush.msra.mxu2 %v271_v9  ;;  %v261_v14 = vld [vmem:[%s1274_s1 + $0x40] sm:$0xff]  ;;  %v254_v18 = vld [vmem:[%s1274_s1 + $0x8] sm:$0xff]  ;;  %v280_v21 = vld [vmem:[%s1275_s2 + $0x38] sm:$0xff] }
  0x25   : > { %497 = vmatpush.msra.mxu1 %v272_v10  ;;  %873 = vmatpush.msra.mxu3 %v272_v10  ;;  %v262_v19 = vld [vmem:[%s1274_s1 + $0x48] sm:$0xff]  ;;  %v281_v20 = vld [vmem:[%s1275_s2 + $0x40] sm:$0xff]  ;;  %v255_v23 = vld [vmem:[%s1274_s1 + $0x10] sm:$0xff] }
  0x26   : > { %433 = vmatpush.msra.mxu0 %v269_v11  ;;  %872 = vmatpush.msra.mxu2 %v269_v11  ;;  %v263_v24 = vld [vmem:[%s1274_s1 + $0x50] sm:$0xff]  ;;  %v284_v25 = vld [vmem:[%s1275_s2 + $0x58] sm:$0xff]  ;;  %v282_v27 = vld [vmem:[%s1275_s2 + $0x48] sm:$0xff] }
  0x27   : > { %498 = vmatpush.msra.mxu1 %v270_v12  ;;  %874 = vmatpush.msra.mxu3 %v270_v12  ;;  %v283_v26 = vld [vmem:[%s1275_s2 + $0x50] sm:$0xff]  ;;  %v256_v28 = vld [vmem:[%s1274_s1 + $0x18] sm:$0xff]  ;;  %v286_v31 = vld [vmem:[%s1275_s2 + $0x68] sm:$0xff] }
  0x28   : > { %836 = vmatmul.msk.f32.vlgmr.msra.gmra.mxu0 %vm369_vm0, %v253_v13  ;;  %844 = vmatmul.msk.f32.vlgmr.msra.gmra.mxu2 %vm369_vm0, %v261_v14  ;;  %v264_v29 = vld [vmem:[%s1274_s1 + $0x58] sm:$0xff]  ;;  %v287_v30 = vld [vmem:[%s1275_s2 + $0x70] sm:$0xff]  ;;  %v285_v32 = vld [vmem:[%s1275_s2 + $0x60] sm:$0xff] }
  0x29   : > { %852 = vmatmul.msk.f32.vlgmr.msra.gmra.mxu1 %vm369_vm0, %v253_v13  ;;  %860 = vmatmul.msk.f32.vlgmr.msra.gmra.mxu3 %vm369_vm0, %v261_v14  ;;  %v257_v33 = vld [vmem:[%s1274_s1 + $0x20] sm:$0xff]  ;;  %v581_v35 = vld [vmem:[%s1276_s3 + $0x8] sm:$0xff]  ;;  %v288_v37 = vld [vmem:[%s1275_s2 + $0x78] sm:$0xff] }
  0x2a   : > { %316 = vperm.xlu2 %902, %v278_v15   ;;  %v265_v34 = vld [vmem:[%s1274_s1 + $0x60] sm:$0xff]  ;;  %v258_v38 = vld [vmem:[%s1274_s1 + $0x28] sm:$0xff]  ;;  %v583_v41 = vld [vmem:[%s1276_s3 + $0x18] sm:$0xff] }
  0x2b   : > { %306 = vperm.xlu1 %901, %v276_v16   ;;  %296 = vperm.xlu0 %900, %v274_v17   ;;  %v580_v36 = vld [vmem:[%s1276_s3] sm:$0xff]  ;;  %v266_v39 = vld [vmem:[%s1274_s1 + $0x68] sm:$0xff]  ;;  %v582_v42 = vld [vmem:[%s1276_s3 + $0x10] sm:$0xff] }
  0x2c   : > { %v584_v40 = vld [vmem:[%s1276_s3 + $0x20] sm:$0xff]  ;;  %v259_v43 = vld [vmem:[%s1274_s1 + $0x30] sm:$0xff]  ;;  %v587_v45 = vld [vmem:[%s1276_s3 + $0x38] sm:$0xff] }
  0x2d   : > { %v267_v44 = vld [vmem:[%s1274_s1 + $0x70] sm:$0xff]  ;;  %v585_v47 = vld [vmem:[%s1276_s3 + $0x28] sm:$0xff]  ;;  %v260_v48 = vld [vmem:[%s1274_s1 + $0x38] sm:$0xff] }
  0x2e   : > { %v586_v46 = vld [vmem:[%s1276_s3 + $0x30] sm:$0xff]  ;;  %v268_v49 = vld [vmem:[%s1274_s1 + $0x78] sm:$0xff]  ;;  %v589_v51 = vld [vmem:[%s1276_s3 + $0x48] sm:$0xff] }
  0x2f   : > { %v590_v50 = vld [vmem:[%s1276_s3 + $0x50] sm:$0xff]  ;;  %v588_v52 = vld [vmem:[%s1276_s3 + $0x40] sm:$0xff]  ;;  %v593_v53 = vld [vmem:[%s1276_s3 + $0x68] sm:$0xff] }
  0x30   : > { %837 = vmatmul.msk.f32.gmra.mxu0 %vm369_vm0, %v254_v18  ;;  %845 = vmatmul.msk.f32.gmra.mxu2 %vm369_vm0, %v262_v19  ;;  %v592_v54 = vld [vmem:[%s1276_s3 + $0x60] sm:$0xff]  ;;  %v591_v55 = vld [vmem:[%s1276_s3 + $0x58] sm:$0xff]  ;;  %v594_v58 = vld [vmem:[%s1276_s3 + $0x70] sm:$0xff] }
  0x31   : > { %853 = vmatmul.msk.f32.gmra.mxu1 %vm369_vm0, %v254_v18  ;;  %861 = vmatmul.msk.f32.gmra.mxu3 %vm369_vm0, %v262_v19  ;;  %v750_v56 = vld [vmem:[#allocation2] sm:$0x1]  ;;  %v595_v57 = vld [vmem:[%s1276_s3 + $0x78] sm:$0xff] }
  0x32   : > { %331 = vperm.xlu2 %902, %v281_v20  }
  0x33   : > { %326 = vperm.xlu1 %901, %v280_v21   ;;  %321 = vperm.xlu0 %900, %v279_v22  }
  0x38   : > { %838 = vmatmul.msk.f32.gmra.mxu0 %vm369_vm0, %v255_v23  ;;  %846 = vmatmul.msk.f32.gmra.mxu2 %vm369_vm0, %v263_v24 }
  0x39   : > { %854 = vmatmul.msk.f32.gmra.mxu1 %vm369_vm0, %v255_v23  ;;  %862 = vmatmul.msk.f32.gmra.mxu3 %vm369_vm0, %v263_v24 }
  0x3a   : > { %346 = vperm.xlu2 %902, %v284_v25  }
  0x3b   : > { %341 = vperm.xlu1 %901, %v283_v26   ;;  %336 = vperm.xlu0 %900, %v282_v27  }
  0x40   : > { %839 = vmatmul.msk.f32.gmra.mxu0 %vm369_vm0, %v256_v28  ;;  %847 = vmatmul.msk.f32.gmra.mxu2 %vm369_vm0, %v264_v29 }
  0x41   : > { %855 = vmatmul.msk.f32.gmra.mxu1 %vm369_vm0, %v256_v28  ;;  %863 = vmatmul.msk.f32.gmra.mxu3 %vm369_vm0, %v264_v29 }
  0x42   : > { %361 = vperm.xlu2 %902, %v287_v30  }
  0x43   : > { %356 = vperm.xlu1 %901, %v286_v31   ;;  %351 = vperm.xlu0 %900, %v285_v32  }
  0x48   : > { %840 = vmatmul.msk.f32.gmra.mxu0 %vm369_vm0, %v257_v33  ;;  %848 = vmatmul.msk.f32.gmra.mxu2 %vm369_vm0, %v265_v34 }
  0x49   : > { %856 = vmatmul.msk.f32.gmra.mxu1 %vm369_vm0, %v257_v33  ;;  %864 = vmatmul.msk.f32.gmra.mxu3 %vm369_vm0, %v265_v34 }
  0x4a   : > { %603 = vperm.xlu2 %902, %v581_v35  }
  0x4b   : > { %598 = vperm.xlu1 %901, %v580_v36   ;;  %366 = vperm.xlu0 %900, %v288_v37  }
  0x50   : > { %841 = vmatmul.msk.f32.gmra.mxu0 %vm369_vm0, %v258_v38  ;;  %849 = vmatmul.msk.f32.gmra.mxu2 %vm369_vm0, %v266_v39 }
  0x51   : > { %857 = vmatmul.msk.f32.gmra.mxu1 %vm369_vm0, %v258_v38  ;;  %865 = vmatmul.msk.f32.gmra.mxu3 %vm369_vm0, %v266_v39 }
  0x52   : > { %618 = vperm.xlu2 %902, %v584_v40  }
  0x53   : > { %613 = vperm.xlu1 %901, %v583_v41   ;;  %608 = vperm.xlu0 %900, %v582_v42  }
  0x58   : > { %842 = vmatmul.msk.f32.gmra.mxu0 %vm369_vm0, %v259_v43  ;;  %850 = vmatmul.msk.f32.gmra.mxu2 %vm369_vm0, %v267_v44 }
  0x59   : > { %858 = vmatmul.msk.f32.gmra.mxu1 %vm369_vm0, %v259_v43  ;;  %866 = vmatmul.msk.f32.gmra.mxu3 %vm369_vm0, %v267_v44 }
  0x5a   : > { %633 = vperm.xlu2 %902, %v587_v45  }
  0x5b   : > { %628 = vperm.xlu1 %901, %v586_v46   ;;  %623 = vperm.xlu0 %900, %v585_v47  }
  0x60   : > { %843 = vmatmul.msk.f32.gmra.mxu0 %vm369_vm0, %v260_v48  ;;  %851 = vmatmul.msk.f32.gmra.mxu2 %vm369_vm0, %v268_v49 }
  0x61   : > { %859 = vmatmul.msk.f32.gmra.mxu1 %vm369_vm0, %v260_v48  ;;  %867 = vmatmul.msk.f32.gmra.mxu3 %vm369_vm0, %v268_v49 }
  0x62   : > { %648 = vperm.xlu2 %902, %v590_v50  }
  0x63   : > { %643 = vperm.xlu1 %901, %v589_v51   ;;  %638 = vperm.xlu0 %900, %v588_v52  }
  0x6a   : > { %663 = vperm.xlu2 %902, %v593_v53  }
  0x6b   : > { %658 = vperm.xlu1 %901, %v592_v54   ;;  %653 = vperm.xlu0 %900, %v591_v55  }
  0x72   : > { %753 = vperm.xlu2 %902, %v750_v56  }
  0x73   : > { %673 = vperm.xlu1 %901, %v595_v57   ;;  %668 = vperm.xlu0 %900, %v594_v58  }
  0x7c   : > { %v1174_v59 = vpop.permute.xlu2 %311 }
  0x84   : > { %v1176_v62 = vpop.permute.xlu2 %316 }
  0x8c   : > { %v1182_v5 = vpop.permute.xlu2 %331 }
  0x94   : > { %v1192_v12 = vpop.permute.xlu2 %346 }
  0x95   : > { %v302_v60 = vpop.permute.xlu1 %301  ;;  %v292_v61 = vpop.permute.xlu0 %291 }
  0x9c   : > { %v1202_v19 = vpop.permute.xlu2 %361 }
  0x9d   : > { %v307_v63 = vpop.permute.xlu1 %306  ;;  %v297_v0 = vpop.permute.xlu0 %296 }
  0xa4   : > { %v604_v28 = vpop.permute.xlu2 %603 }
  0xa5   : > { %v1178_v1 = vpop.permute.xlu1 %326  ;;  %v1180_v2 = vpop.permute.xlu0 %321 }
  0xa6   : > { %v435_v3 = vpop.f32.mrf.mxu0  ;;  %v500_v4 = vpop.f32.mrf.mxu1 }
  0xa7   : > { %v436_v35 = vadd.f32 %v435_v3, %v292_v61  ;;  %v501_v36 = vadd.f32 %v500_v4, %v292_v61 }
  0xa9   : > { %v548_v43 = vmax.f32 %v436_v35, 0.0  ;;  %v549_v44 = vmax.f32 %v501_v36, 0.0 }
  0xab   : > { %v1184_v6 = vpop.f32.mrf.mxu2 }
  0xac   : > { %v1186_v7 = vpop.f32.mrf.mxu3  ;;  %v619_v47 = vpop.permute.xlu2 %618 }
  0xad   : > { %v1188_v8 = vpop.permute.xlu1 %341  ;;  %v1190_v9 = vpop.permute.xlu0 %336 }
  0xae   : > { %v438_v10 = vpop.f32.mrf.mxu0  ;;  %v503_v11 = vpop.f32.mrf.mxu1 }
  0xaf   : > { %v439_v33 = vadd.f32 %v438_v10, %v297_v0  ;;  %v504_v34 = vadd.f32 %v503_v11, %v297_v0 }
  0xb1   : > { %v550_v41 = vmax.f32 %v439_v33, 0.0  ;;  %v551_v42 = vmax.f32 %v504_v34, 0.0 }
  0xb3   : > { %v1194_v13 = vpop.f32.mrf.mxu2  ;;  %v678_v53 = vmul.f32 %v604_v28, %v550_v41  ;;  %v679_v54 = vmul.f32 %v604_v28, %v551_v42 }
  0xb4   : > { %v1196_v14 = vpop.f32.mrf.mxu3  ;;  %v634_v36 = vpop.permute.xlu2 %633 }
  0xb5   : > { %v1198_v15 = vpop.permute.xlu1 %356  ;;  %v1200_v16 = vpop.permute.xlu0 %351 }
  0xb6   : > { %v441_v17 = vpop.f32.mrf.mxu0  ;;  %v506_v18 = vpop.f32.mrf.mxu1 }
  0xb7   : > { %v442_v38 = vadd.f32 %v441_v17, %v302_v60  ;;  %v507_v39 = vadd.f32 %v506_v18, %v302_v60 }
  0xb9   : > { %v552_v48 = vmax.f32 %v442_v38, 0.0  ;;  %v553_v49 = vmax.f32 %v507_v39, 0.0 }
  0xbb   : > { %v1204_v20 = vpop.f32.mrf.mxu2 }
  0xbc   : > { %v1206_v21 = vpop.f32.mrf.mxu3 }
  0xbd   : > { %v599_v22 = vpop.permute.xlu1 %598  ;;  %v1208_v23 = vpop.permute.xlu0 %366 }
  0xbe   : > { %v444_v24 = vpop.f32.mrf.mxu0  ;;  %v509_v25 = vpop.f32.mrf.mxu1  ;;  %v676_v50 = vmul.f32 %v599_v22, %v548_v43  ;;  %v677_v51 = vmul.f32 %v599_v22, %v549_v44 }
  0xbf   : > { %v445_v55 = vadd.f32 %v444_v24, %v307_v63  ;;  %v510_v56 = vadd.f32 %v509_v25, %v307_v63 }
  0xc0   : > { %v708_v4 = vadd.f32 %v678_v53, %v676_v50  ;;  %v729_v10 = vadd.f32 %v679_v54, %v677_v51 }
  0xc1   : > { %v554_v17 = vmax.f32 %v445_v55, 0.0  ;;  %v555_v18 = vmax.f32 %v510_v56, 0.0  ;;  %v466_v55 = vadd.f32 %v1204_v20, %v1188_v8 }
  0xc3   : > { %v1210_v26 = vpop.f32.mrf.mxu2 }
  0xc4   : > { %v1212_v27 = vpop.f32.mrf.mxu3 }
  0xc5   : > { %v609_v29 = vpop.permute.xlu0 %608  ;;  %v614_v32 = vpop.permute.xlu1 %613 }
  0xc6   : > { %v447_v30 = vpop.f32.mrf.mxu0  ;;  %v512_v31 = vpop.f32.mrf.mxu1  ;;  %v680_v57 = vmul.f32 %v609_v29, %v552_v48  ;;  %v681_v58 = vmul.f32 %v609_v29, %v553_v49  ;;  %v682_v34 = vmul.f32 %v614_v32, %v554_v17  ;;  %v683_v35 = vmul.f32 %v614_v32, %v555_v18 }
  0xc7   : > { %v448_v60 = vadd.f32 %v447_v30, %v1174_v59  ;;  %v513_v61 = vadd.f32 %v512_v31, %v1174_v59  ;;  %v460_v48 = vadd.f32 %v1184_v6, %v1182_v5  ;;  %v525_v49 = vadd.f32 %v1186_v7, %v1182_v5 }
  0xc8   : > { %v709_v63 = vadd.f32 %v708_v4, %v680_v57  ;;  %v730_v25 = vadd.f32 %v729_v10, %v681_v58  ;;  %v528_v32 = vadd.f32 %v1196_v14, %v1190_v9  ;;  %v531_v6 = vadd.f32 %v1206_v21, %v1188_v8 }
  0xc9   : > { %v556_v28 = vmax.f32 %v448_v60, 0.0  ;;  %v557_v29 = vmax.f32 %v513_v61, 0.0  ;;  %v564_v14 = vmax.f32 %v460_v48, 0.0  ;;  %v469_v21 = vadd.f32 %v1210_v26, %v1192_v12 }
  0xca   : > { %v710_v41 = vadd.f32 %v709_v63, %v682_v34  ;;  %v731_v42 = vadd.f32 %v730_v25, %v683_v35  ;;  %v567_v4 = vmax.f32 %v528_v32, 0.0  ;;  %v569_v8 = vmax.f32 %v531_v6, 0.0 }
  0xcb   : > { %v1214_v37 = vpop.f32.mrf.mxu2  ;;  %v684_v43 = vmul.f32 %v619_v47, %v556_v28  ;;  %v685_v44 = vmul.f32 %v619_v47, %v557_v29 }
  0xcc   : > { %v1216_v40 = vpop.f32.mrf.mxu3  ;;  %v472_v29 = vadd.f32 %v1214_v37, %v1200_v16 }
  0xcd   : > { %v624_v52 = vpop.permute.xlu0 %623  ;;  %v629_v0 = vpop.permute.xlu1 %628  ;;  %v711_v56 = vadd.f32 %v710_v41, %v684_v43  ;;  %v732_v57 = vadd.f32 %v731_v42, %v685_v44  ;;  %v570_v43 = vmax.f32 %v469_v21, 0.0 }
  0xce   : > { %v450_v45 = vpop.f32.mrf.mxu0  ;;  %v515_v46 = vpop.f32.mrf.mxu1 }
  0xcf   : > { %v451_v22 = vadd.f32 %v450_v45, %v1176_v62  ;;  %v516_v24 = vadd.f32 %v515_v46, %v1176_v62 }
  0xd1   : > { %v558_v38 = vmax.f32 %v451_v22, 0.0  ;;  %v559_v39 = vmax.f32 %v516_v24, 0.0  ;;  %v568_v22 = vmax.f32 %v466_v55, 0.0  ;;  %v649_v24 = vpop.permute.xlu2 %648 }
  0xd3   : > { %v1220_v3 = vpop.f32.mrf.mxu2  ;;  %v686_v51 = vmul.f32 %v624_v52, %v558_v38  ;;  %v687_v53 = vmul.f32 %v624_v52, %v559_v39  ;;  %v565_v52 = vmax.f32 %v525_v49, 0.0  ;;  %v696_v35 = vmul.f32 %v649_v24, %v568_v22 }
  0xd4   : > { %v1222_v11 = vpop.f32.mrf.mxu3  ;;  %v697_v38 = vmul.f32 %v649_v24, %v569_v8 }
  0xd5   : > { %v639_v62 = vpop.permute.xlu0 %638  ;;  %v644_v50 = vpop.permute.xlu1 %643  ;;  %v712_v10 = vadd.f32 %v711_v56, %v686_v51  ;;  %v733_v17 = vadd.f32 %v732_v57, %v687_v53  ;;  %v540_v26 = vadd.f32 %v1222_v11, %v1198_v15 }
  0xd6   : > { %v453_v30 = vpop.f32.mrf.mxu0  ;;  %v518_v33 = vpop.f32.mrf.mxu1  ;;  %v695_v39 = vmul.f32 %v644_v50, %v567_v4 }
  0xd7   : > { %v454_v59 = vadd.f32 %v453_v30, %v1180_v2  ;;  %v519_v31 = vadd.f32 %v518_v33, %v1180_v2  ;;  %v463_v2 = vadd.f32 %v1194_v13, %v1190_v9  ;;  %v537_v30 = vadd.f32 %v1216_v40, %v1200_v16 }
  0xd8   : > { %v475_v33 = vadd.f32 %v1220_v3, %v1198_v15  ;;  %v572_v40 = vmax.f32 %v472_v29, 0.0  ;;  %v575_v15 = vmax.f32 %v540_v26, 0.0 }
  0xd9   : > { %v560_v45 = vmax.f32 %v454_v59, 0.0  ;;  %v561_v46 = vmax.f32 %v519_v31, 0.0  ;;  %v566_v61 = vmax.f32 %v463_v2, 0.0  ;;  %v692_v31 = vmul.f32 %v639_v62, %v564_v14  ;;  %v664_v6 = vpop.permute.xlu2 %663 }
  0xda   : > { %v573_v44 = vmax.f32 %v537_v30, 0.0 }
  0xdb   : > { %v477_v54 = vpop.f32.mrf.mxu2  ;;  %v688_v58 = vmul.f32 %v629_v0, %v560_v45  ;;  %v689_v13 = vmul.f32 %v629_v0, %v561_v46  ;;  %v534_v0 = vadd.f32 %v1212_v27, %v1192_v12  ;;  %v693_v12 = vmul.f32 %v639_v62, %v565_v52 }
  0xdc   : > { %v542_v47 = vpop.f32.mrf.mxu3  ;;  %v574_v46 = vmax.f32 %v475_v33, 0.0  ;;  %v478_v62 = vadd.f32 %v477_v54, %v1202_v19 }
  0xdd   : > { %v713_v63 = vadd.f32 %v712_v10, %v688_v58  ;;  %v734_v25 = vadd.f32 %v733_v17, %v689_v13  ;;  %v654_v59 = vpop.permute.xlu0 %653  ;;  %v659_v41 = vpop.permute.xlu1 %658  ;;  %v571_v16 = vmax.f32 %v534_v0, 0.0  ;;  %v543_v49 = vadd.f32 %v542_v47, %v1202_v19 }
  0xde   : > { %v456_v5 = vpop.f32.mrf.mxu0  ;;  %v521_v7 = vpop.f32.mrf.mxu1  ;;  %v698_v2 = vmul.f32 %v654_v59, %v570_v43  ;;  %v700_v56 = vmul.f32 %v659_v41, %v572_v40  ;;  %v701_v57 = vmul.f32 %v659_v41, %v573_v44  ;;  %v702_v58 = vmul.f32 %v664_v6, %v574_v46 }
  0xdf   : > { %v457_v60 = vadd.f32 %v456_v5, %v1178_v1  ;;  %v522_v9 = vadd.f32 %v521_v7, %v1178_v1  ;;  %v699_v32 = vmul.f32 %v654_v59, %v571_v16  ;;  %v703_v13 = vmul.f32 %v664_v6, %v575_v15 }
  0xe1   : > { %v562_v20 = vmax.f32 %v457_v60, 0.0  ;;  %v563_v18 = vmax.f32 %v522_v9, 0.0  ;;  %v576_v60 = vmax.f32 %v478_v62, 0.0  ;;  %v577_v9 = vmax.f32 %v543_v49, 0.0  ;;  %v754_v26 = vpop.permute.xlu2 %753 }
  0xe3   : > { %v690_v1 = vmul.f32 %v634_v36, %v562_v20  ;;  %v691_v28 = vmul.f32 %v634_v36, %v563_v18  ;;  %v694_v36 = vmul.f32 %v644_v50, %v566_v61  ;;  %v480_v3 = vpop.f32.mrf.mxu2 }
  0xe4   : > { %v545_v45 = vpop.f32.mrf.mxu3  ;;  %v481_v50 = vadd.f32 %v480_v3, %v1208_v23 }
  0xe5   : > { %v714_v27 = vadd.f32 %v713_v63, %v690_v1  ;;  %v735_v34 = vadd.f32 %v734_v25, %v691_v28  ;;  %v546_v51 = vadd.f32 %v545_v45, %v1208_v23  ;;  %v669_v54 = vpop.permute.xlu0 %668  ;;  %v674_v17 = vpop.permute.xlu1 %673 }
  0xe6   : > { %v578_v14 = vmax.f32 %v481_v50, 0.0  ;;  %v704_v61 = vmul.f32 %v669_v54, %v576_v60  ;;  %v705_v4 = vmul.f32 %v669_v54, %v577_v9 }
  0xe7   : > { %v715_v37 = vadd.f32 %v714_v27, %v692_v31  ;;  %v736_v42 = vadd.f32 %v735_v34, %v693_v12  ;;  %v579_v19 = vmax.f32 %v546_v51, 0.0  ;;  %v756_v12 = vperm.slane %v754_v26, 0 }
  0xe8   : > { %v706_v20 = vmul.f32 %v674_v17, %v578_v14  ;;  %v765_v27 = vlaneseq }
  0xe9   : > { %v716_v11 = vadd.f32 %v715_v37, %v694_v36  ;;  %v737_v48 = vadd.f32 %v736_v42, %v695_v39  ;;  %v707_v18 = vmul.f32 %v674_v17, %v579_v19 }
  0xea   : > { %vm767_vm2 = vcmp.lt.s32.totalorder %v765_v27, 256 }
  0xeb   : > { %v717_v53 = vadd.f32 %v716_v11, %v696_v35  ;;  %v738_v55 = vadd.f32 %v737_v48, %v697_v38 }
  0xed   : > { %v718_v5 = vadd.f32 %v717_v53, %v698_v2  ;;  %v739_v7 = vadd.f32 %v738_v55, %v699_v32 }
  0xef   : > { %v719_v47 = vadd.f32 %v718_v5, %v700_v56  ;;  %v740_v52 = vadd.f32 %v739_v7, %v701_v57 }
  0xf1   : > { %v720_v23 = vadd.f32 %v719_v47, %v702_v58  ;;  %v741_v10 = vadd.f32 %v740_v52, %v703_v13 }
  0xf3   : > { %v721_v22 = vadd.f32 %v720_v23, %v704_v61  ;;  %v742_v8 = vadd.f32 %v741_v10, %v705_v4 }
  0xf5   : > { %v722_v21 = vadd.f32 %v721_v22, %v706_v20  ;;  %v743_v0 = vadd.f32 %v742_v8, %v707_v18 }
  0xf7   : > { %v723_v24 = vrot.slane %v722_v21, 4  ;;  %v744_v63 = vrot.slane %v743_v0, 4 }
  0xf9   : > { %v724_v25 = vadd.f32 %v723_v24, %v722_v21  ;;  %v745_v1 = vadd.f32 %v744_v63, %v743_v0 }
  0xfb   : > { %v725_v28 = vrot.slane %v724_v25, 2  ;;  %v746_v29 = vrot.slane %v745_v1, 2 }
  0xfd   : > { %v726_v30 = vadd.f32 %v725_v28, %v724_v25  ;;  %v747_v33 = vadd.f32 %v746_v29, %v745_v1 }
  0xff   : > { %v727_v59 = vrot.slane %v726_v30, 1  ;;  %v748_v31 = vrot.slane %v747_v33, 1 }
 0x101   : > { %v728_v34 = vadd.f32 %v727_v59, %v726_v30  ;;  %v749_v35 = vadd.f32 %v748_v31, %v747_v33 }
 0x103   : > { %v758_v38 = vadd.f32 %v756_v12, %v749_v35  ;;  %v757_v36 = vadd.f32 %v756_v12, %v728_v34 }
 0x105   : > { %v761_v39 = vrot.slane %v758_v38, 7 }
 0x107   : > { %v763_v41 = vsel %vm762_vm1, %v757_v36, %v761_v39 }
 0x108   : > { %769 = vst.msk [vmem:[%s251_s22] sm:$0x3] %vm767_vm2, %v763_v41 }
 0x109 PF: > { %p14_p9 = scmp.ge.s32.totalorder %s978_s23, 4   ;;  %s1279_s20 = smov %s921_s21 }
 0x10a   : > { %s1280_s21 = smov %s987_s26  ;;  %s1281_s22 = smov %s978_s23 }
 0x10b   :  { %16 = sbr.rel (!%p14_p9) target bundleno = 5 (0x5), region = 98 }

</bundles_post_ra>
